<compile_context>
chip_gen: v5e
topology: v5e:2x2
jax: 0.10.0
libtpu: 0.0.40
codegen_flags: <defaults>
</compile_context>

<pallas_src>
import functools
import math

import jax
import jax.numpy as jnp
from jax import lax
from jax.experimental import pallas as pl
from jax.experimental.pallas import tpu as pltpu


def _layer_norm(x, gamma, beta, eps):
    mu = jnp.mean(x, axis=-1, keepdims=True)
    var = jnp.mean((x - mu) ** 2, axis=-1, keepdims=True)
    return (x - mu) * lax.rsqrt(var + eps) * gamma + beta


def _gelu_exact(x):
    # F.gelu default (erf-based), f32 math.
    return 0.5 * x * (1.0 + lax.erf(x * (1.0 / math.sqrt(2.0))))


def encoder_layer_kernel(
    xq_ref, xkv_ref, bias_ref,
    wq_ref, bq_ref, wkt_ref, bkc_ref, wvt_ref, bvc_ref, wo_ref, bo_ref,
    g1_ref, be1_ref, w1_ref, b1_ref, w2_ref, b2_ref, g2_ref, be2_ref,
    out_ref,
    k_scr, v_scr,
    *, n_heads, head_dim, eps, kv_chunk,
):
    tile_s, D = out_ref.shape
    H, hd = n_heads, head_dim
    S = k_scr.shape[-1]                      # padded sequence length
    t = pl.program_id(1)

    # --- K/V projections: once per batch element, cached as (H, hd, S) bf16 so S
    #     (a multiple of the tile) sits in the lane dimension. Chunked over S to
    #     bound f32 temporaries (v7x 64 MiB VMEM).
    @pl.when(t == 0)
    def _():
        for c0 in range(0, S, kv_chunk):
            x_c = xkv_ref[c0:c0 + kv_chunk, :]                           # (chunk, D) bf16
            k_c = jnp.einsum("ed,sd->es", wkt_ref[...], x_c,
                             preferred_element_type=jnp.float32) + bkc_ref[...]
            v_c = jnp.einsum("ed,sd->es", wvt_ref[...], x_c,
                             preferred_element_type=jnp.float32) + bvc_ref[...]
            k_scr[:, :, c0:c0 + kv_chunk] = k_c.reshape(H, hd, kv_chunk).astype(jnp.bfloat16)
            v_scr[:, :, c0:c0 + kv_chunk] = v_c.reshape(H, hd, kv_chunk).astype(jnp.bfloat16)

    # --- query tile (residual path stays f32; bf16 only as matmul operands) ---
    x_t = xq_ref[...]                                                    # (tile_s, D) f32
    x_bf = x_t.astype(jnp.bfloat16)

    # 1/sqrt(head_dim) is pre-folded into wq/bq on the host.
    q = jnp.dot(x_bf, wq_ref[...], preferred_element_type=jnp.float32) + bq_ref[...]
    qh = jnp.transpose(q.reshape(tile_s, H, hd), (1, 0, 2)).astype(jnp.bfloat16)  # (H,tq,hd)

    # --- head-batched scaled dot-product attention (K lane-dense along S) ---
    scores = jnp.einsum("hqd,hds->hqs", qh, k_scr[...],
                        preferred_element_type=jnp.float32)              # (H, tq, S)
    scores = scores + bias_ref[...].astype(jnp.float32)[None, :, :]      # additive mask bias
    m = jnp.max(scores, axis=-1, keepdims=True)
    e = jnp.exp(scores - m)
    denom = jnp.sum(e, axis=-1, keepdims=True)
    p = (e * pl.reciprocal(denom)).astype(jnp.bfloat16)                  # exact reciprocal

    ctx = jnp.einsum("hqs,hes->hqe", p, v_scr[...],
                     preferred_element_type=jnp.float32)                 # (H, tq, hd)
    ctx_bf = ctx.astype(jnp.bfloat16)

    # --- output projection with head-merge folded in: sum_h ctx[h] @ Wo[h] ---
    attn = jnp.zeros((tile_s, D), jnp.float32) + bo_ref[...]
    for h in range(H):                                                   # H static & small
        attn = attn + jnp.dot(ctx_bf[h], wo_ref[h],
                              preferred_element_type=jnp.float32)

    # --- residual + LayerNorm 1 ---
    x1 = _layer_norm(x_t + attn, g1_ref[...], be1_ref[...], eps)

    # --- position-wise FFN (exact GELU) ---
    h1 = _gelu_exact(jnp.dot(x1.astype(jnp.bfloat16), w1_ref[...],
                             preferred_element_type=jnp.float32) + b1_ref[...])
    ff = jnp.dot(h1.astype(jnp.bfloat16), w2_ref[...],
                 preferred_element_type=jnp.float32) + b2_ref[...]

    # --- residual + LayerNorm 2 ---
    out_ref[...] = _layer_norm(ff + x1, g2_ref[...], be2_ref[...], eps).astype(out_ref.dtype)


def _seq_tiling(S, max_tile):
    """Pad S to a tile-friendly length; never fall back to a giant single tile."""
    if S <= max_tile:
        s_pad = max(8, ((S + 7) // 8) * 8)        # sublane-aligned single tile
        return s_pad, s_pad
    s_pad = ((S + max_tile - 1) // max_tile) * max_tile
    return s_pad, max_tile


def encoder_layer(x, mask, params, *, n_heads, layer_norm_epsilon=1e-12):
    """x: (B, S, D) float32, mask: (B, S, S) int (nonzero -> masked)."""
    B, S, D = x.shape
    assert D % n_heads == 0, "d_hidden must be divisible by n_heads"
    head_dim = D // n_heads
    ff_dim = params["w1"].shape[1]

    # --- per-generation budgets ---
    try:
        vmem_cap = pltpu.get_tpu_info().vmem_capacity_bytes
    except Exception:
        vmem_cap = 64 * 1024 * 1024               # conservative fallback (v7x-sized)
    vmem_limit = min(int(0.75 * vmem_cap), 100 * 1024 * 1024)
    max_tile = 128 if vmem_cap <= 64 * 1024 * 1024 else 256
    # TODO(synk): for very long S on v7x, convert the softmax to a flash-style online
    # loop over K/V chunks instead of materializing (H, tile_s, S) f32 scores.

    S_pad, tile_s = _seq_tiling(S, max_tile)
    n_tiles = S_pad // tile_s
    if S_pad > 1024:
        kv_chunk = 512 if S_pad % 512 == 0 else (256 if S_pad % 256 == 0 else S_pad)
    else:
        kv_chunk = S_pad

    # --- host-side prep: scale folded into Wq/bq, transposed/reshaped weights, bf16 ---
    inv_scale = 1.0 / math.sqrt(float(head_dim))
    wq = (params["wq"] * inv_scale).astype(jnp.bfloat16)
    bq = params["bq"] * inv_scale
    wkT = params["wk"].T.astype(jnp.bfloat16)                  # (D_out, D_in) -> K^T via trans_b
    wvT = params["wv"].T.astype(jnp.bfloat16)
    bk_col = params["bk"].reshape(D, 1)
    bv_col = params["bv"].reshape(D, 1)
    wo_h = params["wo"].reshape(n_heads, head_dim, D).astype(jnp.bfloat16)
    w1 = params["w1"].astype(jnp.bfloat16)
    w2 = params["w2"].astype(jnp.bfloat16)

    # additive mask bias (bf16); pad sequence, padded keys masked with -1e9.
    bias = jnp.where(mask != 0, jnp.float32(-1e9), jnp.float32(0.0))
    if S_pad != S:
        x_p = jnp.pad(x, ((0, 0), (0, S_pad - S), (0, 0)))
        bias = jnp.pad(bias, ((0, 0), (0, S_pad - S), (0, S_pad - S)),
                       constant_values=-1e9)
    else:
        x_p = x
    bias = bias.astype(jnp.bfloat16)
    x_kv = x_p.astype(jnp.bfloat16)                            # bf16 full-seq view for K/V

    def const_spec(shape):
        nd = len(shape)
        idx = lambda b, t, _n=nd: (0,) * _n
        try:
            # weights/biases never change block index -> single-buffer to halve VMEM.
            return pl.BlockSpec(shape, idx, pipeline_mode=pl.Buffered(1))
        except TypeError:                                      # older jax without pipeline_mode
            return pl.BlockSpec(shape, idx)

    in_specs = [
        pl.BlockSpec((pl.Squeezed(), tile_s, D), lambda b, t: (b, t, 0)),      # x tile (f32, Q/residual)
        pl.BlockSpec((pl.Squeezed(), S_pad, D), lambda b, t: (b, 0, 0)),       # x full seq (bf16, K/V)
        pl.BlockSpec((pl.Squeezed(), tile_s, S_pad), lambda b, t: (b, t, 0)),  # additive mask bias (bf16)
        const_spec((D, D)), const_spec((1, D)),                                # wq, bq
        const_spec((D, D)), const_spec((D, 1)),                                # wk^T, bk (column)
        const_spec((D, D)), const_spec((D, 1)),                                # wv^T, bv (column)
        const_spec((n_heads, head_dim, D)), const_spec((1, D)),                # wo (head-major), bo
        const_spec((1, D)), const_spec((1, D)),                                # ln1 gamma, beta
        const_spec((D, ff_dim)), const_spec((1, ff_dim)),                      # w1, b1
        const_spec((ff_dim, D)), const_spec((1, D)),                           # w2, b2
        const_spec((1, D)), const_spec((1, D)),                                # ln2 gamma, beta
    ]
    # TODO(synk): on v7x with very large D/ff, stream W1/W2 over ff-dim chunks
    # (pltpu.emit_pipeline) instead of keeping them fully resident.

    kernel = functools.partial(
        encoder_layer_kernel,
        n_heads=n_heads, head_dim=head_dim, eps=layer_norm_epsilon, kv_chunk=kv_chunk,
    )

    out = pl.pallas_call(
        kernel,
        out_shape=jax.ShapeDtypeStruct((B, S_pad, D), jnp.float32),
        grid_spec=pltpu.PrefetchScalarGridSpec(
            num_scalar_prefetch=0,
            grid=(B, n_tiles),
            in_specs=in_specs,
            out_specs=pl.BlockSpec((pl.Squeezed(), tile_s, D), lambda b, t: (b, t, 0)),
            scratch_shapes=[
                pltpu.VMEM((n_heads, head_dim, S_pad), jnp.bfloat16),   # K^T cache (H, hd, S)
                pltpu.VMEM((n_heads, head_dim, S_pad), jnp.bfloat16),   # V^T cache (H, hd, S)
            ],
        ),
        compiler_params=pltpu.CompilerParams(
            # TODO(synk): on v7x, hoist the K/V projection out of the kernel so the
            # seq-tile axis can be marked "parallel" (both TensorCores at B==1).
            dimension_semantics=("parallel", "arbitrary"),
            vmem_limit_bytes=vmem_limit,
        ),
    )(
        x_p, x_kv, bias,
        wq, bq, wkT, bk_col, wvT, bv_col, wo_h, params["bo"],
        params["g1"], params["be1"],
        w1, params["b1"], w2, params["b2"],
        params["g2"], params["be2"],
    )
    return out[:, :S, :] if S_pad != S else out


def _ref_forward(x, mask, params, *, n_heads, eps=1e-12):
    """Pure-JAX f32 reference mirroring the PyTorch module."""
    B, S, D = x.shape
    hd = D // n_heads

    def lin(a, w, b):
        return a @ w + b[0]

    q = lin(x, params["wq"], params["bq"]).reshape(B, S, n_heads, hd).transpose(0, 2, 1, 3)
    k = lin(x, params["wk"], params["bk"]).reshape(B, S, n_heads, hd).transpose(0, 2, 1, 3)
    v = lin(x, params["wv"], params["bv"]).reshape(B, S, n_heads, hd).transpose(0, 2, 1, 3)
    scores = jnp.einsum("bhqd,bhkd->bhqk", q, k) / math.sqrt(hd)
    scores = jnp.where(mask[:, None, :, :] != 0, -1e9, scores)
    p = jax.nn.softmax(scores, axis=-1)
    ctx = jnp.einsum("bhqk,bhkd->bhqd", p, v).transpose(0, 2, 1, 3).reshape(B, S, D)
    attn_out = lin(ctx, params["wo"], params["bo"])

    def ln(a, g, b):
        mu = a.mean(-1, keepdims=True)
        var = ((a - mu) ** 2).mean(-1, keepdims=True)
        return (a - mu) / jnp.sqrt(var + eps) * g[0] + b[0]

    x1 = ln(x + attn_out, params["g1"], params["be1"])
    z = x1 @ params["w1"] + params["b1"][0]
    h1 = 0.5 * z * (1.0 + lax.erf(z / math.sqrt(2.0)))
    ff = h1 @ params["w2"] + params["b2"][0]
    return ln(ff + x1, params["g2"], params["be2"])


def make_params(key, d_hidden, ff_dim):
    ks = jax.random.split(key, 12)
    s = 0.05

    def w(k, shape):
        return jax.random.normal(k, shape, jnp.float32) * s

    return {
        "wq": w(ks[0], (d_hidden, d_hidden)), "bq": w(ks[1], (1, d_hidden)),
        "wk": w(ks[2], (d_hidden, d_hidden)), "bk": w(ks[3], (1, d_hidden)),
        "wv": w(ks[4], (d_hidden, d_hidden)), "bv": w(ks[5], (1, d_hidden)),
        "wo": w(ks[6], (d_hidden, d_hidden)), "bo": w(ks[7], (1, d_hidden)),
        "g1": jnp.ones((1, d_hidden), jnp.float32), "be1": jnp.zeros((1, d_hidden), jnp.float32),
        "w1": w(ks[8], (d_hidden, ff_dim)), "b1": w(ks[9], (1, ff_dim)),
        "w2": w(ks[10], (ff_dim, d_hidden)), "b2": w(ks[11], (1, d_hidden)),
        "g2": jnp.ones((1, d_hidden), jnp.float32), "be2": jnp.zeros((1, d_hidden), jnp.float32),
    }


if __name__ == "__main__":
    B, S, D, H, FF = 2, 8, 32, 4, 64

    key = jax.random.PRNGKey(0)
    kx, kp = jax.random.split(key)
    x = jax.random.normal(kx, (B, S, D), jnp.float32)

    # padding-style mask: last 2 key positions masked out (nonzero == masked).
    mask = jnp.zeros((B, S, S), dtype=jnp.int32).at[:, :, S - 2:].set(1)

    params = make_params(kp, D, FF)

    out = encoder_layer(x, mask, params, n_heads=H)
    out = jax.block_until_ready(out)

    ref = _ref_forward(x, mask, params, n_heads=H)
    assert out.shape == (B, S, D)
    # bf16 matmul operands (f32 accumulation) -> relaxed tolerance vs the f32 reference.
    assert jnp.allclose(out, ref, atol=2e-2, rtol=2e-2), float(jnp.abs(out - ref).max())

    print("KERNEL_OK")
</pallas_src>

<mosaic_0001>
module attributes {stable_mosaic.version = 11 : i64} {
  func.func @encoder_layer_kernel(%arg0: i32, %arg1: i32, %arg2: memref<1x8x32xf32, #tpu.memory_space<vmem>>, %arg3: memref<1x8x32xbf16, #tpu.memory_space<vmem>>, %arg4: memref<1x8x8xbf16, #tpu.memory_space<vmem>>, %arg5: memref<32x32xbf16, #tpu.memory_space<vmem>>, %arg6: memref<1x32xf32, #tpu.memory_space<vmem>>, %arg7: memref<32x32xbf16, #tpu.memory_space<vmem>>, %arg8: memref<32x1xf32, #tpu.memory_space<vmem>>, %arg9: memref<32x32xbf16, #tpu.memory_space<vmem>>, %arg10: memref<32x1xf32, #tpu.memory_space<vmem>>, %arg11: memref<4x8x32xbf16, #tpu.memory_space<vmem>>, %arg12: memref<1x32xf32, #tpu.memory_space<vmem>>, %arg13: memref<1x32xf32, #tpu.memory_space<vmem>>, %arg14: memref<1x32xf32, #tpu.memory_space<vmem>>, %arg15: memref<32x64xbf16, #tpu.memory_space<vmem>>, %arg16: memref<1x64xf32, #tpu.memory_space<vmem>>, %arg17: memref<64x32xbf16, #tpu.memory_space<vmem>>, %arg18: memref<1x32xf32, #tpu.memory_space<vmem>>, %arg19: memref<1x32xf32, #tpu.memory_space<vmem>>, %arg20: memref<1x32xf32, #tpu.memory_space<vmem>>, %arg21: memref<1x8x32xf32, #tpu.memory_space<vmem>>, %arg22: memref<4x8x8xbf16, #tpu.memory_space<vmem>>, %arg23: memref<4x8x8xbf16, #tpu.memory_space<vmem>>) attributes {dimension_semantics = [#tpu.dimension_semantics<parallel>, #tpu.dimension_semantics<arbitrary>], iteration_bounds = array<i64: 2, 1>, scalar_prefetch = 0 : i64, scratch_operands = 2 : i64, tpu.core_type = #tpu.core_type<tc>, window_params = [{transform_indices = @transform_0, window_bounds = array<i64: 1, 8, 32>}, {transform_indices = @transform_1, window_bounds = array<i64: 1, 8, 32>}, {transform_indices = @transform_2, window_bounds = array<i64: 1, 8, 8>}, {pipeline_mode = #tpu.pipeline_mode<synchronous>, transform_indices = @transform_3, window_bounds = array<i64: 32, 32>}, {pipeline_mode = #tpu.pipeline_mode<synchronous>, transform_indices = @transform_4, window_bounds = array<i64: 1, 32>}, {pipeline_mode = #tpu.pipeline_mode<synchronous>, transform_indices = @transform_5, window_bounds = array<i64: 32, 32>}, {pipeline_mode = #tpu.pipeline_mode<synchronous>, transform_indices = @transform_6, window_bounds = array<i64: 32, 1>}, {pipeline_mode = #tpu.pipeline_mode<synchronous>, transform_indices = @transform_7, window_bounds = array<i64: 32, 32>}, {pipeline_mode = #tpu.pipeline_mode<synchronous>, transform_indices = @transform_8, window_bounds = array<i64: 32, 1>}, {pipeline_mode = #tpu.pipeline_mode<synchronous>, transform_indices = @transform_9, window_bounds = array<i64: 4, 8, 32>}, {pipeline_mode = #tpu.pipeline_mode<synchronous>, transform_indices = @transform_10, window_bounds = array<i64: 1, 32>}, {pipeline_mode = #tpu.pipeline_mode<synchronous>, transform_indices = @transform_11, window_bounds = array<i64: 1, 32>}, {pipeline_mode = #tpu.pipeline_mode<synchronous>, transform_indices = @transform_12, window_bounds = array<i64: 1, 32>}, {pipeline_mode = #tpu.pipeline_mode<synchronous>, transform_indices = @transform_13, window_bounds = array<i64: 32, 64>}, {pipeline_mode = #tpu.pipeline_mode<synchronous>, transform_indices = @transform_14, window_bounds = array<i64: 1, 64>}, {pipeline_mode = #tpu.pipeline_mode<synchronous>, transform_indices = @transform_15, window_bounds = array<i64: 64, 32>}, {pipeline_mode = #tpu.pipeline_mode<synchronous>, transform_indices = @transform_16, window_bounds = array<i64: 1, 32>}, {pipeline_mode = #tpu.pipeline_mode<synchronous>, transform_indices = @transform_17, window_bounds = array<i64: 1, 32>}, {pipeline_mode = #tpu.pipeline_mode<synchronous>, transform_indices = @transform_18, window_bounds = array<i64: 1, 32>}, {transform_indices = @transform_19, window_bounds = array<i64: 1, 8, 32>}]} {
    %c0_i32 = arith.constant 0 : i32
    %0 = arith.cmpi eq, %arg1, %c0_i32 : i32
    %1 = arith.extui %0 : i1 to i32
    %c0_i32_0 = arith.constant 0 : i32
    %2 = arith.cmpi ne, %1, %c0_i32_0 : i32
    scf.if %2 {
      %c0_70 = arith.constant 0 : index
      %c0_71 = arith.constant 0 : index
      %c0_72 = arith.constant 0 : index
      %137 = vector.load %arg3[%c0_70, %c0_71, %c0_72] : memref<1x8x32xbf16, #tpu.memory_space<vmem>>, vector<1x8x32xbf16>
      %138 = vector.shape_cast %137 : vector<1x8x32xbf16> to vector<8x32xbf16>
      %c0_73 = arith.constant 0 : index
      %c0_74 = arith.constant 0 : index
      %139 = vector.load %arg7[%c0_73, %c0_74] : memref<32x32xbf16, #tpu.memory_space<vmem>>, vector<32x32xbf16>
      "tpu.trace_start"() <{level = 10 : i32, message = "ed,sd->es"}> : () -> ()
      %cst_75 = arith.constant dense<0.000000e+00> : vector<32x8xf32>
      %140 = tpu.matmul %139, %138, %cst_75 {dimension_numbers = #tpu.dot_dimension_numbers<[1], [1], [0], [0], [0, 0, 1, 0], [], []>} : vector<32x32xbf16>, vector<8x32xbf16>, vector<32x8xf32> -> vector<32x8xf32>
      "tpu.trace_stop"() : () -> ()
      %c0_76 = arith.constant 0 : index
      %c0_77 = arith.constant 0 : index
      %141 = vector.load %arg8[%c0_76, %c0_77] : memref<32x1xf32, #tpu.memory_space<vmem>>, vector<32x1xf32>
      %142 = vector.broadcast %141 : vector<32x1xf32> to vector<32x8xf32>
      %143 = arith.addf %140, %142 : vector<32x8xf32>
      %c0_78 = arith.constant 0 : index
      %c0_79 = arith.constant 0 : index
      %144 = vector.load %arg9[%c0_78, %c0_79] : memref<32x32xbf16, #tpu.memory_space<vmem>>, vector<32x32xbf16>
      "tpu.trace_start"() <{level = 10 : i32, message = "ed,sd->es"}> : () -> ()
      %cst_80 = arith.constant dense<0.000000e+00> : vector<32x8xf32>
      %145 = tpu.matmul %144, %138, %cst_80 {dimension_numbers = #tpu.dot_dimension_numbers<[1], [1], [0], [0], [0, 0, 1, 0], [], []>} : vector<32x32xbf16>, vector<8x32xbf16>, vector<32x8xf32> -> vector<32x8xf32>
      "tpu.trace_stop"() : () -> ()
      %c0_81 = arith.constant 0 : index
      %c0_82 = arith.constant 0 : index
      %146 = vector.load %arg10[%c0_81, %c0_82] : memref<32x1xf32, #tpu.memory_space<vmem>>, vector<32x1xf32>
      %147 = vector.broadcast %146 : vector<32x1xf32> to vector<32x8xf32>
      %148 = arith.addf %145, %147 : vector<32x8xf32>
      %149 = vector.shape_cast %143 : vector<32x8xf32> to vector<4x8x8xf32>
      %150 = arith.truncf %149 : vector<4x8x8xf32> to vector<4x8x8xbf16>
      %c0_83 = arith.constant 0 : index
      %c0_84 = arith.constant 0 : index
      %c0_85 = arith.constant 0 : index
      %151 = vector.load %arg22[%c0_83, %c0_84, %c0_85] : memref<4x8x8xbf16, #tpu.memory_space<vmem>>, vector<4x8x8xbf16>
      tpu.vector_store %arg22[%c0_83, %c0_84, %c0_85], %150 {strides = array<i32>} : memref<4x8x8xbf16, #tpu.memory_space<vmem>>, vector<4x8x8xbf16>,
      %152 = vector.shape_cast %148 : vector<32x8xf32> to vector<4x8x8xf32>
      %153 = arith.truncf %152 : vector<4x8x8xf32> to vector<4x8x8xbf16>
      %c0_86 = arith.constant 0 : index
      %c0_87 = arith.constant 0 : index
      %c0_88 = arith.constant 0 : index
      %154 = vector.load %arg23[%c0_86, %c0_87, %c0_88] : memref<4x8x8xbf16, #tpu.memory_space<vmem>>, vector<4x8x8xbf16>
      tpu.vector_store %arg23[%c0_86, %c0_87, %c0_88], %153 {strides = array<i32>} : memref<4x8x8xbf16, #tpu.memory_space<vmem>>, vector<4x8x8xbf16>,
    } else {
    }
    %c0 = arith.constant 0 : index
    %c0_1 = arith.constant 0 : index
    %c0_2 = arith.constant 0 : index
    %3 = vector.load %arg2[%c0, %c0_1, %c0_2] : memref<1x8x32xf32, #tpu.memory_space<vmem>>, vector<1x8x32xf32>
    %4 = vector.shape_cast %3 : vector<1x8x32xf32> to vector<8x32xf32>
    %5 = arith.truncf %4 : vector<8x32xf32> to vector<8x32xbf16>
    %c0_3 = arith.constant 0 : index
    %c0_4 = arith.constant 0 : index
    %6 = vector.load %arg5[%c0_3, %c0_4] : memref<32x32xbf16, #tpu.memory_space<vmem>>, vector<32x32xbf16>
    %cst = arith.constant dense<0.000000e+00> : vector<8x32xf32>
    %7 = tpu.matmul %5, %6, %cst {dimension_numbers = #tpu.dot_dimension_numbers<[1], [0], [0], [1], [0, 0, 1, 1], [], []>} : vector<8x32xbf16>, vector<32x32xbf16>, vector<8x32xf32> -> vector<8x32xf32>
    %c0_5 = arith.constant 0 : index
    %c0_6 = arith.constant 0 : index
    %8 = vector.load %arg6[%c0_5, %c0_6] : memref<1x32xf32, #tpu.memory_space<vmem>>, vector<1x32xf32>
    %9 = vector.broadcast %8 : vector<1x32xf32> to vector<8x32xf32>
    %10 = arith.addf %7, %9 : vector<8x32xf32>
    %11 = vector.shape_cast %10 : vector<8x32xf32> to vector<8x4x8xf32>
    %12 = tpu.transpose %11, [1, 0, 2] : vector<8x4x8xf32> -> vector<4x8x8xf32>
    %13 = arith.truncf %12 : vector<4x8x8xf32> to vector<4x8x8xbf16>
    %c0_7 = arith.constant 0 : index
    %c0_8 = arith.constant 0 : index
    %c0_9 = arith.constant 0 : index
    %14 = vector.load %arg22[%c0_7, %c0_8, %c0_9] : memref<4x8x8xbf16, #tpu.memory_space<vmem>>, vector<4x8x8xbf16>
    "tpu.trace_start"() <{level = 10 : i32, message = "hqd,hds->hqs"}> : () -> ()
    %cst_10 = arith.constant dense<0.000000e+00> : vector<4x8x8xf32>
    %15 = tpu.matmul %13, %14, %cst_10 {dimension_numbers = #tpu.dot_dimension_numbers<[2], [1], [1], [2], [0, 0, 0, 1, 1, 2], [0], [0]>} : vector<4x8x8xbf16>, vector<4x8x8xbf16>, vector<4x8x8xf32> -> vector<4x8x8xf32>
    "tpu.trace_stop"() : () -> ()
    %c0_11 = arith.constant 0 : index
    %c0_12 = arith.constant 0 : index
    %c0_13 = arith.constant 0 : index
    %16 = vector.load %arg4[%c0_11, %c0_12, %c0_13] : memref<1x8x8xbf16, #tpu.memory_space<vmem>>, vector<1x8x8xbf16>
    %17 = vector.shape_cast %16 : vector<1x8x8xbf16> to vector<8x8xbf16>
    %18 = arith.extf %17 : vector<8x8xbf16> to vector<8x8xf32>
    %19 = vector.shape_cast %18 : vector<8x8xf32> to vector<1x8x8xf32>
    %20 = vector.broadcast %19 : vector<1x8x8xf32> to vector<4x8x8xf32>
    %21 = arith.addf %15, %20 : vector<4x8x8xf32>
    %cst_14 = arith.constant dense<0xFF800000> : vector<4x8xf32>
    %22 = vector.multi_reduction <maximumf>, %21, %cst_14 [2] : vector<4x8x8xf32> to vector<4x8xf32>
    %23 = vector.shape_cast %22 : vector<4x8xf32> to vector<4x8x1xf32>
    %24 = vector.broadcast %23 : vector<4x8x1xf32> to vector<4x8x8xf32>
    %25 = arith.subf %21, %24 : vector<4x8x8xf32>
    %26 = math.exp %25 : vector<4x8x8xf32>
    %cst_15 = arith.constant dense<0.000000e+00> : vector<4x8xf32>
    %27 = vector.multi_reduction <add>, %26, %cst_15 [2] : vector<4x8x8xf32> to vector<4x8xf32>
    %28 = vector.shape_cast %27 : vector<4x8xf32> to vector<4x8x1xf32>
    %29 = tpu.reciprocal %28 : vector<4x8x1xf32> -> vector<4x8x1xf32>
    %30 = vector.broadcast %29 : vector<4x8x1xf32> to vector<4x8x8xf32>
    %31 = arith.mulf %26, %30 : vector<4x8x8xf32>
    %32 = arith.truncf %31 : vector<4x8x8xf32> to vector<4x8x8xbf16>
    %c0_16 = arith.constant 0 : index
    %c0_17 = arith.constant 0 : index
    %c0_18 = arith.constant 0 : index
    %33 = vector.load %arg23[%c0_16, %c0_17, %c0_18] : memref<4x8x8xbf16, #tpu.memory_space<vmem>>, vector<4x8x8xbf16>
    "tpu.trace_start"() <{level = 10 : i32, message = "hqs,hes->hqe"}> : () -> ()
    %cst_19 = arith.constant dense<0.000000e+00> : vector<4x8x8xf32>
    %34 = tpu.matmul %32, %33, %cst_19 {dimension_numbers = #tpu.dot_dimension_numbers<[2], [2], [1], [1], [0, 0, 0, 1, 1, 1], [0], [0]>} : vector<4x8x8xbf16>, vector<4x8x8xbf16>, vector<4x8x8xf32> -> vector<4x8x8xf32>
    "tpu.trace_stop"() : () -> ()
    %35 = arith.truncf %34 : vector<4x8x8xf32> to vector<4x8x8xbf16>
    %cst_20 = arith.constant 0.000000e+00 : f32
    %36 = vector.broadcast %cst_20 : f32 to vector<8x32xf32>
    %c0_21 = arith.constant 0 : index
    %c0_22 = arith.constant 0 : index
    %37 = vector.load %arg12[%c0_21, %c0_22] : memref<1x32xf32, #tpu.memory_space<vmem>>, vector<1x32xf32>
    %38 = vector.broadcast %37 : vector<1x32xf32> to vector<8x32xf32>
    %39 = arith.addf %36, %38 : vector<8x32xf32>
    %40 = vector.extract_strided_slice %35 {offsets = [0, 0, 0], sizes = [1, 8, 8], strides = [1, 1, 1]} : vector<4x8x8xbf16> to vector<1x8x8xbf16>
    %41 = vector.shape_cast %40 : vector<1x8x8xbf16> to vector<8x8xbf16>
    %c0_23 = arith.constant 0 : index
    %c0_24 = arith.constant 0 : index
    %c0_25 = arith.constant 0 : index
    %42 = vector.load %arg11[%c0_23, %c0_24, %c0_25] : memref<4x8x32xbf16, #tpu.memory_space<vmem>>, vector<1x8x32xbf16>
    %43 = vector.shape_cast %42 : vector<1x8x32xbf16> to vector<8x32xbf16>
    %cst_26 = arith.constant dense<0.000000e+00> : vector<8x32xf32>
    %44 = tpu.matmul %41, %43, %cst_26 {dimension_numbers = #tpu.dot_dimension_numbers<[1], [0], [0], [1], [0, 0, 1, 1], [], []>} : vector<8x8xbf16>, vector<8x32xbf16>, vector<8x32xf32> -> vector<8x32xf32>
    %45 = arith.addf %39, %44 : vector<8x32xf32>
    %46 = vector.extract_strided_slice %35 {offsets = [1, 0, 0], sizes = [1, 8, 8], strides = [1, 1, 1]} : vector<4x8x8xbf16> to vector<1x8x8xbf16>
    %47 = vector.shape_cast %46 : vector<1x8x8xbf16> to vector<8x8xbf16>
    %c1 = arith.constant 1 : index
    %c0_27 = arith.constant 0 : index
    %c0_28 = arith.constant 0 : index
    %48 = vector.load %arg11[%c1, %c0_27, %c0_28] : memref<4x8x32xbf16, #tpu.memory_space<vmem>>, vector<1x8x32xbf16>
    %49 = vector.shape_cast %48 : vector<1x8x32xbf16> to vector<8x32xbf16>
    %cst_29 = arith.constant dense<0.000000e+00> : vector<8x32xf32>
    %50 = tpu.matmul %47, %49, %cst_29 {dimension_numbers = #tpu.dot_dimension_numbers<[1], [0], [0], [1], [0, 0, 1, 1], [], []>} : vector<8x8xbf16>, vector<8x32xbf16>, vector<8x32xf32> -> vector<8x32xf32>
    %51 = arith.addf %45, %50 : vector<8x32xf32>
    %52 = vector.extract_strided_slice %35 {offsets = [2, 0, 0], sizes = [1, 8, 8], strides = [1, 1, 1]} : vector<4x8x8xbf16> to vector<1x8x8xbf16>
    %53 = vector.shape_cast %52 : vector<1x8x8xbf16> to vector<8x8xbf16>
    %c2 = arith.constant 2 : index
    %c0_30 = arith.constant 0 : index
    %c0_31 = arith.constant 0 : index
    %54 = vector.load %arg11[%c2, %c0_30, %c0_31] : memref<4x8x32xbf16, #tpu.memory_space<vmem>>, vector<1x8x32xbf16>
    %55 = vector.shape_cast %54 : vector<1x8x32xbf16> to vector<8x32xbf16>
    %cst_32 = arith.constant dense<0.000000e+00> : vector<8x32xf32>
    %56 = tpu.matmul %53, %55, %cst_32 {dimension_numbers = #tpu.dot_dimension_numbers<[1], [0], [0], [1], [0, 0, 1, 1], [], []>} : vector<8x8xbf16>, vector<8x32xbf16>, vector<8x32xf32> -> vector<8x32xf32>
    %57 = arith.addf %51, %56 : vector<8x32xf32>
    %58 = vector.extract_strided_slice %35 {offsets = [3, 0, 0], sizes = [1, 8, 8], strides = [1, 1, 1]} : vector<4x8x8xbf16> to vector<1x8x8xbf16>
    %59 = vector.shape_cast %58 : vector<1x8x8xbf16> to vector<8x8xbf16>
    %c3 = arith.constant 3 : index
    %c0_33 = arith.constant 0 : index
    %c0_34 = arith.constant 0 : index
    %60 = vector.load %arg11[%c3, %c0_33, %c0_34] : memref<4x8x32xbf16, #tpu.memory_space<vmem>>, vector<1x8x32xbf16>
    %61 = vector.shape_cast %60 : vector<1x8x32xbf16> to vector<8x32xbf16>
    %cst_35 = arith.constant dense<0.000000e+00> : vector<8x32xf32>
    %62 = tpu.matmul %59, %61, %cst_35 {dimension_numbers = #tpu.dot_dimension_numbers<[1], [0], [0], [1], [0, 0, 1, 1], [], []>} : vector<8x8xbf16>, vector<8x32xbf16>, vector<8x32xf32> -> vector<8x32xf32>
    %63 = arith.addf %57, %62 : vector<8x32xf32>
    %64 = arith.addf %4, %63 : vector<8x32xf32>
    %c0_36 = arith.constant 0 : index
    %c0_37 = arith.constant 0 : index
    %65 = vector.load %arg13[%c0_36, %c0_37] : memref<1x32xf32, #tpu.memory_space<vmem>>, vector<1x32xf32>
    %c0_38 = arith.constant 0 : index
    %c0_39 = arith.constant 0 : index
    %66 = vector.load %arg14[%c0_38, %c0_39] : memref<1x32xf32, #tpu.memory_space<vmem>>, vector<1x32xf32>
    %cst_40 = arith.constant dense<0.000000e+00> : vector<8xf32>
    %67 = vector.multi_reduction <add>, %64, %cst_40 [1] : vector<8x32xf32> to vector<8xf32>
    %68 = vector.shape_cast %67 : vector<8xf32> to vector<8x1xf32>
    %cst_41 = arith.constant 3.200000e+01 : f32
    %69 = vector.broadcast %cst_41 : f32 to vector<8x1xf32>
    %70 = arith.divf %68, %69 : vector<8x1xf32>
    %71 = vector.broadcast %70 : vector<8x1xf32> to vector<8x32xf32>
    %72 = arith.subf %64, %71 : vector<8x32xf32>
    %73 = arith.mulf %72, %72 : vector<8x32xf32>
    %cst_42 = arith.constant dense<0.000000e+00> : vector<8xf32>
    %74 = vector.multi_reduction <add>, %73, %cst_42 [1] : vector<8x32xf32> to vector<8xf32>
    %75 = vector.shape_cast %74 : vector<8xf32> to vector<8x1xf32>
    %cst_43 = arith.constant 3.200000e+01 : f32
    %76 = vector.broadcast %cst_43 : f32 to vector<8x1xf32>
    %77 = arith.divf %75, %76 : vector<8x1xf32>
    %78 = vector.broadcast %70 : vector<8x1xf32> to vector<8x32xf32>
    %79 = arith.subf %64, %78 : vector<8x32xf32>
    %cst_44 = arith.constant 9.99999996E-13 : f32
    %80 = vector.broadcast %cst_44 : f32 to vector<8x1xf32>
    %81 = arith.addf %77, %80 : vector<8x1xf32>
    %82 = math.rsqrt %81 : vector<8x1xf32>
    %83 = vector.broadcast %82 : vector<8x1xf32> to vector<8x32xf32>
    %84 = arith.mulf %79, %83 : vector<8x32xf32>
    %85 = vector.broadcast %65 : vector<1x32xf32> to vector<8x32xf32>
    %86 = arith.mulf %84, %85 : vector<8x32xf32>
    %87 = vector.broadcast %66 : vector<1x32xf32> to vector<8x32xf32>
    %88 = arith.addf %86, %87 : vector<8x32xf32>
    %89 = arith.truncf %88 : vector<8x32xf32> to vector<8x32xbf16>
    %c0_45 = arith.constant 0 : index
    %c0_46 = arith.constant 0 : index
    %90 = vector.load %arg15[%c0_45, %c0_46] : memref<32x64xbf16, #tpu.memory_space<vmem>>, vector<32x64xbf16>
    %cst_47 = arith.constant dense<0.000000e+00> : vector<8x64xf32>
    %91 = tpu.matmul %89, %90, %cst_47 {dimension_numbers = #tpu.dot_dimension_numbers<[1], [0], [0], [1], [0, 0, 1, 1], [], []>} : vector<8x32xbf16>, vector<32x64xbf16>, vector<8x64xf32> -> vector<8x64xf32>
    %c0_48 = arith.constant 0 : index
    %c0_49 = arith.constant 0 : index
    %92 = vector.load %arg16[%c0_48, %c0_49] : memref<1x64xf32, #tpu.memory_space<vmem>>, vector<1x64xf32>
    %93 = vector.broadcast %92 : vector<1x64xf32> to vector<8x64xf32>
    %94 = arith.addf %91, %93 : vector<8x64xf32>
    %cst_50 = arith.constant 5.000000e-01 : f32
    %95 = vector.broadcast %cst_50 : f32 to vector<8x64xf32>
    %96 = arith.mulf %95, %94 : vector<8x64xf32>
    %cst_51 = arith.constant 0.707106769 : f32
    %97 = vector.broadcast %cst_51 : f32 to vector<8x64xf32>
    %98 = arith.mulf %94, %97 : vector<8x64xf32>
    %99 = math.erf %98 : vector<8x64xf32>
    %cst_52 = arith.constant 1.000000e+00 : f32
    %100 = vector.broadcast %cst_52 : f32 to vector<8x64xf32>
    %101 = arith.addf %100, %99 : vector<8x64xf32>
    %102 = arith.mulf %96, %101 : vector<8x64xf32>
    %103 = arith.truncf %102 : vector<8x64xf32> to vector<8x64xbf16>
    %c0_53 = arith.constant 0 : index
    %c0_54 = arith.constant 0 : index
    %104 = vector.load %arg17[%c0_53, %c0_54] : memref<64x32xbf16, #tpu.memory_space<vmem>>, vector<64x32xbf16>
    %cst_55 = arith.constant dense<0.000000e+00> : vector<8x32xf32>
    %105 = tpu.matmul %103, %104, %cst_55 {dimension_numbers = #tpu.dot_dimension_numbers<[1], [0], [0], [1], [0, 0, 1, 1], [], []>} : vector<8x64xbf16>, vector<64x32xbf16>, vector<8x32xf32> -> vector<8x32xf32>
    %c0_56 = arith.constant 0 : index
    %c0_57 = arith.constant 0 : index
    %106 = vector.load %arg18[%c0_56, %c0_57] : memref<1x32xf32, #tpu.memory_space<vmem>>, vector<1x32xf32>
    %107 = vector.broadcast %106 : vector<1x32xf32> to vector<8x32xf32>
    %108 = arith.addf %105, %107 : vector<8x32xf32>
    %109 = arith.addf %108, %88 : vector<8x32xf32>
    %c0_58 = arith.constant 0 : index
    %c0_59 = arith.constant 0 : index
    %110 = vector.load %arg19[%c0_58, %c0_59] : memref<1x32xf32, #tpu.memory_space<vmem>>, vector<1x32xf32>
    %c0_60 = arith.constant 0 : index
    %c0_61 = arith.constant 0 : index
    %111 = vector.load %arg20[%c0_60, %c0_61] : memref<1x32xf32, #tpu.memory_space<vmem>>, vector<1x32xf32>
    %cst_62 = arith.constant dense<0.000000e+00> : vector<8xf32>
    %112 = vector.multi_reduction <add>, %109, %cst_62 [1] : vector<8x32xf32> to vector<8xf32>
    %113 = vector.shape_cast %112 : vector<8xf32> to vector<8x1xf32>
    %cst_63 = arith.constant 3.200000e+01 : f32
    %114 = vector.broadcast %cst_63 : f32 to vector<8x1xf32>
    %115 = arith.divf %113, %114 : vector<8x1xf32>
    %116 = vector.broadcast %115 : vector<8x1xf32> to vector<8x32xf32>
    %117 = arith.subf %109, %116 : vector<8x32xf32>
    %118 = arith.mulf %117, %117 : vector<8x32xf32>
    %cst_64 = arith.constant dense<0.000000e+00> : vector<8xf32>
    %119 = vector.multi_reduction <add>, %118, %cst_64 [1] : vector<8x32xf32> to vector<8xf32>
    %120 = vector.shape_cast %119 : vector<8xf32> to vector<8x1xf32>
    %cst_65 = arith.constant 3.200000e+01 : f32
    %121 = vector.broadcast %cst_65 : f32 to vector<8x1xf32>
    %122 = arith.divf %120, %121 : vector<8x1xf32>
    %123 = vector.broadcast %115 : vector<8x1xf32> to vector<8x32xf32>
    %124 = arith.subf %109, %123 : vector<8x32xf32>
    %cst_66 = arith.constant 9.99999996E-13 : f32
    %125 = vector.broadcast %cst_66 : f32 to vector<8x1xf32>
    %126 = arith.addf %122, %125 : vector<8x1xf32>
    %127 = math.rsqrt %126 : vector<8x1xf32>
    %128 = vector.broadcast %127 : vector<8x1xf32> to vector<8x32xf32>
    %129 = arith.mulf %124, %128 : vector<8x32xf32>
    %130 = vector.broadcast %110 : vector<1x32xf32> to vector<8x32xf32>
    %131 = arith.mulf %129, %130 : vector<8x32xf32>
    %132 = vector.broadcast %111 : vector<1x32xf32> to vector<8x32xf32>
    %133 = arith.addf %131, %132 : vector<8x32xf32>
    %c0_67 = arith.constant 0 : index
    %c0_68 = arith.constant 0 : index
    %c0_69 = arith.constant 0 : index
    %134 = vector.load %arg21[%c0_67, %c0_68, %c0_69] : memref<1x8x32xf32, #tpu.memory_space<vmem>>, vector<1x8x32xf32>
    %135 = vector.shape_cast %134 : vector<1x8x32xf32> to vector<8x32xf32>
    %136 = vector.shape_cast %133 : vector<8x32xf32> to vector<1x8x32xf32>
    tpu.vector_store %arg21[%c0_67, %c0_68, %c0_69], %136 {strides = array<i32>} : memref<1x8x32xf32, #tpu.memory_space<vmem>>, vector<1x8x32xf32>,
    return
  }
  func.func @transform_0(%arg0: i32, %arg1: i32) -> (i32, i32, i32) {
    %c0_i32 = arith.constant 0 : i32
    %c0_i32_0 = arith.constant 0 : i32
    return %arg0, %arg1, %c0_i32 : i32, i32, i32
  }
  func.func @transform_1(%arg0: i32, %arg1: i32) -> (i32, i32, i32) {
    %c0_i32 = arith.constant 0 : i32
    %c0_i32_0 = arith.constant 0 : i32
    %c0_i32_1 = arith.constant 0 : i32
    return %arg0, %c0_i32, %c0_i32_0 : i32, i32, i32
  }
  func.func @transform_2(%arg0: i32, %arg1: i32) -> (i32, i32, i32) {
    %c0_i32 = arith.constant 0 : i32
    %c0_i32_0 = arith.constant 0 : i32
    return %arg0, %arg1, %c0_i32 : i32, i32, i32
  }
  func.func @transform_3(%arg0: i32, %arg1: i32) -> (i32, i32) {
    %c0_i32 = arith.constant 0 : i32
    %c0_i32_0 = arith.constant 0 : i32
    %c0_i32_1 = arith.constant 0 : i32
    return %c0_i32, %c0_i32_0 : i32, i32
  }
  func.func @transform_4(%arg0: i32, %arg1: i32) -> (i32, i32) {
    %c0_i32 = arith.constant 0 : i32
    %c0_i32_0 = arith.constant 0 : i32
    %c0_i32_1 = arith.constant 0 : i32
    return %c0_i32, %c0_i32_0 : i32, i32
  }
  func.func @transform_5(%arg0: i32, %arg1: i32) -> (i32, i32) {
    %c0_i32 = arith.constant 0 : i32
    %c0_i32_0 = arith.constant 0 : i32
    %c0_i32_1 = arith.constant 0 : i32
    return %c0_i32, %c0_i32_0 : i32, i32
  }
  func.func @transform_6(%arg0: i32, %arg1: i32) -> (i32, i32) {
    %c0_i32 = arith.constant 0 : i32
    %c0_i32_0 = arith.constant 0 : i32
    %c0_i32_1 = arith.constant 0 : i32
    return %c0_i32, %c0_i32_0 : i32, i32
  }
  func.func @transform_7(%arg0: i32, %arg1: i32) -> (i32, i32) {
    %c0_i32 = arith.constant 0 : i32
    %c0_i32_0 = arith.constant 0 : i32
    %c0_i32_1 = arith.constant 0 : i32
    return %c0_i32, %c0_i32_0 : i32, i32
  }
  func.func @transform_8(%arg0: i32, %arg1: i32) -> (i32, i32) {
    %c0_i32 = arith.constant 0 : i32
    %c0_i32_0 = arith.constant 0 : i32
    %c0_i32_1 = arith.constant 0 : i32
    return %c0_i32, %c0_i32_0 : i32, i32
  }
  func.func @transform_9(%arg0: i32, %arg1: i32) -> (i32, i32, i32) {
    %c0_i32 = arith.constant 0 : i32
    %c0_i32_0 = arith.constant 0 : i32
    %c0_i32_1 = arith.constant 0 : i32
    %c0_i32_2 = arith.constant 0 : i32
    return %c0_i32, %c0_i32_0, %c0_i32_1 : i32, i32, i32
  }
  func.func @transform_10(%arg0: i32, %arg1: i32) -> (i32, i32) {
    %c0_i32 = arith.constant 0 : i32
    %c0_i32_0 = arith.constant 0 : i32
    %c0_i32_1 = arith.constant 0 : i32
    return %c0_i32, %c0_i32_0 : i32, i32
  }
  func.func @transform_11(%arg0: i32, %arg1: i32) -> (i32, i32) {
    %c0_i32 = arith.constant 0 : i32
    %c0_i32_0 = arith.constant 0 : i32
    %c0_i32_1 = arith.constant 0 : i32
    return %c0_i32, %c0_i32_0 : i32, i32
  }
  func.func @transform_12(%arg0: i32, %arg1: i32) -> (i32, i32) {
    %c0_i32 = arith.constant 0 : i32
    %c0_i32_0 = arith.constant 0 : i32
    %c0_i32_1 = arith.constant 0 : i32
    return %c0_i32, %c0_i32_0 : i32, i32
  }
  func.func @transform_13(%arg0: i32, %arg1: i32) -> (i32, i32) {
    %c0_i32 = arith.constant 0 : i32
    %c0_i32_0 = arith.constant 0 : i32
    %c0_i32_1 = arith.constant 0 : i32
    return %c0_i32, %c0_i32_0 : i32, i32
  }
  func.func @transform_14(%arg0: i32, %arg1: i32) -> (i32, i32) {
    %c0_i32 = arith.constant 0 : i32
    %c0_i32_0 = arith.constant 0 : i32
    %c0_i32_1 = arith.constant 0 : i32
    return %c0_i32, %c0_i32_0 : i32, i32
  }
  func.func @transform_15(%arg0: i32, %arg1: i32) -> (i32, i32) {
    %c0_i32 = arith.constant 0 : i32
    %c0_i32_0 = arith.constant 0 : i32
    %c0_i32_1 = arith.constant 0 : i32
    return %c0_i32, %c0_i32_0 : i32, i32
  }
  func.func @transform_16(%arg0: i32, %arg1: i32) -> (i32, i32) {
    %c0_i32 = arith.constant 0 : i32
    %c0_i32_0 = arith.constant 0 : i32
    %c0_i32_1 = arith.constant 0 : i32
    return %c0_i32, %c0_i32_0 : i32, i32
  }
  func.func @transform_17(%arg0: i32, %arg1: i32) -> (i32, i32) {
    %c0_i32 = arith.constant 0 : i32
    %c0_i32_0 = arith.constant 0 : i32
    %c0_i32_1 = arith.constant 0 : i32
    return %c0_i32, %c0_i32_0 : i32, i32
  }
  func.func @transform_18(%arg0: i32, %arg1: i32) -> (i32, i32) {
    %c0_i32 = arith.constant 0 : i32
    %c0_i32_0 = arith.constant 0 : i32
    %c0_i32_1 = arith.constant 0 : i32
    return %c0_i32, %c0_i32_0 : i32, i32
  }
  func.func @transform_19(%arg0: i32, %arg1: i32) -> (i32, i32, i32) {
    %c0_i32 = arith.constant 0 : i32
    %c0_i32_0 = arith.constant 0 : i32
    return %arg0, %arg1, %c0_i32 : i32, i32, i32
  }
}

</mosaic_0001>

<bundles_post_ra>
// kernel: tpu_custom_call.1
= control target key start
LH: loop header
LB: loop body
LE: loop exit
PB: predicated region body
PF: predicated region fallthrough
CT: control target
= control target key end

     0   :  { %s2539_s0 = inlined_call_operand.vmem [shape: f32[2,8,32], index: 0, kind: input, shape index: {}]   ;;  %s2540_s1 = inlined_call_operand.hbm [shape: bf16[2,8,32], index: 1, kind: input, shape index: {}]   ;;  %s2541_s2 = inlined_call_operand.hbm [shape: bf16[2,8,8], index: 2, kind: input, shape index: {}]   ;;  %s2542_s3 = inlined_call_operand.vmem [shape: bf16[32,32], index: 3, kind: input, shape index: {}]   ;;  %s2543_s4 = inlined_call_operand.vmem [shape: f32[1,32], index: 4, kind: input, shape index: {}]   ;;  %s2544_s5 = inlined_call_operand.vmem [shape: bf16[32,32], index: 5, kind: input, shape index: {}]   ;;  %s2545_s6 = inlined_call_operand.vmem [shape: f32[32,1], index: 6, kind: input, shape index: {}]   ;;  %s2546_s7 = inlined_call_operand.vmem [shape: bf16[32,32], index: 7, kind: input, shape index: {}]   ;;  %s2547_s8 = inlined_call_operand.vmem [shape: f32[32,1], index: 8, kind: input, shape index: {}]   ;;  %s2548_s9 = inlined_call_operand.vmem [shape: bf16[4,8,32], index: 9, kind: input, shape index: {}]   ;;  %s2549_s10 = inlined_call_operand.vmem [shape: f32[1,32], index: 10, kind: input, shape index: {}]   ;;  %s2550_s11 = inlined_call_operand.vmem [shape: f32[1,32], index: 11, kind: input, shape index: {}]   ;;  %s2551_s12 = inlined_call_operand.vmem [shape: f32[1,32], index: 12, kind: input, shape index: {}]   ;;  %s2552_s13 = inlined_call_operand.vmem [shape: bf16[32,64], index: 13, kind: input, shape index: {}]   ;;  %s2553_s14 = inlined_call_operand.vmem [shape: f32[1,64], index: 14, kind: input, shape index: {}]   ;;  %s2554_s15 = inlined_call_operand.vmem [shape: bf16[64,32], index: 15, kind: input, shape index: {}]   ;;  %s2555_s16 = inlined_call_operand.vmem [shape: f32[1,32], index: 16, kind: input, shape index: {}]   ;;  %s2556_s17 = inlined_call_operand.vmem [shape: f32[1,32], index: 17, kind: input, shape index: {}]   ;;  %s2557_s18 = inlined_call_operand.vmem [shape: f32[1,32], index: 18, kind: input, shape index: {}]   ;;  %s2558_s19 = inlined_call_operand.hbm [shape: f32[2,8,32], index: 19, kind: output, shape index: {}]  }
   0x1   :  { %2569 = sst [smem:[#allocation20_spill]] %s2539_s0 }
   0x2   :  { %2570 = sst [smem:[#allocation21_spill]] %s2540_s1 }
   0x3   :  { %2571 = sst [smem:[#allocation22_spill]] %s2541_s2 }
   0x4   :  { %2572 = sst [smem:[#allocation23_spill]] %s2542_s3 }
   0x5   :  { %2573 = sst [smem:[#allocation24_spill]] %s2551_s12 }
   0x6   :  { %2574 = sst [smem:[#allocation25_spill]] %s2553_s14 }
   0x7   :  { %2575 = sst [smem:[#allocation26_spill]] %s2554_s15 }
   0x8   :  { %2576 = sst [smem:[#allocation27_spill]] %s2555_s16 }
   0x9   :  { %2577 = sst [smem:[#allocation28_spill]] %s2556_s17 }
   0xa   :  { %2578 = sst [smem:[#allocation29_spill]] %s2557_s18 }
   0xb   :  { %2579 = sst [smem:[#allocation30_spill]] %s2558_s19 }
   0xc   :  { %24 = vsyncpa [#allocation5], 0 }
   0xd   :  { %26 = vsyncpa [#allocation5 + $0x1], 0 }
   0xe   :  { %27 = vsyncpa [#allocation8], 0 }
   0xf   :  { %29 = vsyncpa [#allocation8 + $0x1], 0 }
  0x10   :  { %30 = vsyncpa [#allocation6], 0 }
  0x11   :  { %32 = vsyncpa [#allocation6 + $0x1], 0  ;;  %s2189_s0 = smov 0   ;;  %s2191_s30 = smov 0  }
  0x12   :  { %s2193_s20 = smov 0   ;;  %s2195_s21 = smov 0  }
  0x13   :  { %s2197_s1 = smov 0   ;;  %s2199_s22 = smov 0  }
  0x14 LB: > { %2580 = sst [smem:[#allocation13_spill]] %s2060_s0  ;;  %s1725_s2 = sadd.s32 4294967295, %s2080_s22   ;;  %s2080_s22 = sphi %s2199_s22, %s38_s22   ;;  %s2076_s1 = sphi %s2197_s1, %s2608_s1   ;;  %s2072_s21 = sphi %s2195_s21, %s2607_s21   ;;  %s2068_s20 = sphi %s2193_s20, %s2606_s20   ;;  %s2064_s30 = sphi %s2191_s30, %s2610_s30   ;;  %s2060_s0 = sphi %s2189_s0, %s2609_s0  }
  0x15   : > { %2581 = sst [smem:[#allocation14_spill]] %s2068_s20  ;;  %s1726_s23 = sadd.s32 4294967294, %s2080_s22  }
  0x16   : > { %2582 = sst [smem:[#allocation15_spill]] %s2076_s1  ;;  %s50_s24 = sadd.s32 1, %s2076_s1 }
  0x17   : > { %s85_s25 = sadd.s32 1, %s2068_s20  ;;  %p52_p0 = scmp.ge.s32.totalorder %s50_s24, 2 }
  0x18   : > { %p92_p1 = scmp.ne.s32.totalorder %s2068_s20, %s2064_s30  ;;  %p93_p2 = scmp.eq.s32.totalorder %s2080_s22, 0 }
  0x19   : > { %p98_p3 = scmp.ne.s32.totalorder %s2064_s30, %s2060_s0  ;;  %s2612_s24 = smov (%p52_p0, %s50_s24), 0 }
  0x1a   : > { %2583 = sst [smem:[#allocation16_spill]] %s2612_s24  ;;  %p2230_p4 = por %p93_p2, %p92_p1 }
  0x1b   : > { %p99_p5 = scmp.eq.s32.totalorder %s1725_s2, 0  ;;  %s82_s26 = ssub.s32 %s2076_s1, %s2612_s24 }
  0x1c   : > { %p488_p6 = scmp.eq.s32.totalorder %s1725_s2, 1  ;;  %p83_p7 = scmp.eq.s32.totalorder %s82_s26, 0 }
  0x1d   : > { %p2236_p8 = por %p99_p5, %p98_p3  ;;  %p494_p10 = scmp.eq.s32.totalorder %s1726_s23, 1 }
  0x1e   : > { %p2240_p9 = por %p488_p6, %p92_p1  ;;  %p1728_p12 = scmp.ge.s32.totalorder %s2080_s22, 2 }
  0x1f   : > { %s2245_s29 = scalar_select %p83_p7, %s2068_s20, %s85_s25  }
  0x20   : > { %s2586_s28 = scalar_select %p2240_p9, 1, 0 }
  0x21   : > { %2588 = sst [smem:[#allocation18_spill]] %s2245_s29  ;;  %p2247_p11 = por %p494_p10, %p98_p3 }
  0x22   : > { %2587 = sst [smem:[#allocation17_spill]] %s2586_s28  ;;  %p1842_p13 = scmp.lt.s32.totalorder %s2080_s22, 2 }
  0x23   : > { %s2589_s0 = scalar_select %p2247_p11, 1, 0 }
  0x24   : > { %s572_s2 = sand.u32 1, %s2068_s20   ;;  %s1730_s24 = sshll.u32 %s2076_s1, 2 }
  0x25   : > { %2590 = sst [smem:[#allocation19_spill]] %s2589_s0  ;;  %s1729_s26 = sshll.u32 %s572_s2, 2 }
  0x26   : > { %s2591_s17 = sld [smem:[#allocation21_spill]]  ;;  %s576_s15 = scalar_lea.vmem [#allocation4], %s1729_s26 }
  0x27   : > { %s584_s28 = sshll.u32 %s576_s15, 4  ;;  %p1832_p0 = pnand %p1842_p13, %p2230_p4  ;;  %s585_s28 = int_to_ptr.vmem [resolvable:$true] %s584_s28 }
  0x28   : > { %p1733_p1 = scmp.ge.s32.totalorder %s2080_s22, 1  ;;  %p609_p2 = scmp.lt.s32.totalorder %s2080_s22, 3 }
  0x29   : > { %s573_s23 = scalar_lea.sflag [#allocation5], %s572_s2  ;;  %s2592_s20 = sld [smem:[#allocation22_spill]] }
  0x2a   : > { %p610_p3 = pnand %p1733_p1, %p609_p2  ;;  %s595_s0 = scalar_lea.vmem [#allocation7], %s1729_s26 }
  0x2b   : > { %s604_s12 = sshll.u32 %s595_s0, 4  ;;  %s592_s15 = scalar_lea.sflag [#allocation8], %s572_s2  ;;  %s605_s12 = int_to_ptr.vmem [resolvable:$true] %s604_s12 }
  0x2c   : > { %s580_s16 = scalar_lea.hbm %s2591_s17, %s1730_s24 }
  0x2d   : > { %s582_s14 = sshll.u32 %s580_s16, 4  ;;  %613 = sbr.rel (%p610_p3) target bundleno = 1923 (0x783), region = 96  ;;  %s583_s14 = int_to_ptr.hbm [resolvable:$true] %s582_s14 }
  0x2e   : > { %1834 = dma.hbm_to_vmem [thread:$0]  (!%p1832_p0), %s583_s14, 64, %s585_s28, %s573_s23  }
  0x2f   : > { %s600_s1 = scalar_lea.hbm %s2592_s20, %s1730_s24  ;;  %s2266_s16 = sand.u32 (!%p610_p3), 1, %s2064_s30  }
  0x30   : > { %s602_s18 = sshll.u32 %s600_s1, 4  ;;  %s1734_s14 = sshll.u32 (!%p610_p3), %s2266_s16, 2  ;;  %s603_s18 = int_to_ptr.hbm [resolvable:$true] %s602_s18 }
  0x31   : > { %1837 = dma.hbm_to_vmem [thread:$0]  (!%p1832_p0), %s603_s18, 64, %s605_s12, %s592_s15  }
  0x32   : > { %s616_s17 = scalar_lea.sflag [#allocation5], %s2266_s16  ;;  %s619_s19 = scalar_lea.vmem [#allocation4], %s1734_s14 }
  0x33   : > { %2047 = dma.done.wait (%p2236_p8), %s616_s17, 64  }
  0x34   : > { %2049 = vsyncadd (%p2236_p8), %s616_s17, 4294967232  ;;  %s626_s0 = scalar_lea.sflag [#allocation8], %s2266_s16  ;;  %s2275_s20 = scalar_lea.vmem [#allocation7], %s1734_s14 }
  0x35   : > { %2051 = dma.done.wait (%p2236_p8), %s626_s0, 64  }
  0x36   : > { %2053 = vsyncadd (%p2236_p8), %s626_s0, 4294967232  ;;  %p697_p4 = scmp.lt.s32.totalorder %s2072_s21, 1  ;;  %s2593_s28 = sld [smem:[#allocation20_spill]]  ;;  %vm748_vm0 = vcmask 261120   ;;  %v709_v1 = vld [vmem:[%s619_s19] sm:$0xf] }
  0x37   : > { %s2594_s23 = sld [smem:[#allocation23_spill]]  ;;  %v756_v4 = vsel %vm748_vm0, %v709_v1, 0  ;;  %v1813_v6 = vld [vmem:[%s2544_s5] sm:$0xff]  ;;  %v1814_v7 = vld [vmem:[%s2544_s5 + $0x8] sm:$0xff]  ;;  %v2082_v9 = vmov 0   ;;  %v716_v10 = vld [vmem:[%s2545_s6 + $0x10] sm:$0xff] }
  0x38   : > { %s698_s12 = scalar_select %p697_p4, %s2072_s21, 1  ;;  %765 = vmatpush.bf16.xpose.msra.mxu0 %v756_v4  ;;  %828 = vmatpush.bf16.xpose.msra.mxu1 %v756_v4  ;;  %v715_v8 = vld [vmem:[%s2545_s6 + $0x8] sm:$0xff]  ;;  %v1902_v11 = vld [vmem:[%s2543_s4] ss:$0 sm:$0xff]  ;;  %v717_v16 = vld [vmem:[%s2545_s6 + $0x18] sm:$0xff]  ;;  %vm844_vm1 = vcmask 60416  }
  0x39   : > { %1899 = vset.pattern.permute.xlu1 %v2082_v9  ;;  %1900 = vset.pattern.permute.xlu2 %v2082_v9  ;;  %v714_v15 = vld [vmem:[%s2545_s6] sm:$0xff]  ;;  %s2085_s25 = smov 112   ;;  %vm1031_vm2 = vcmask 1043456   ;;  %v2086_v28 = vmov 1983009808   ;;  %vm907_vm3 = vcmask 1047556  }
  0x3a   : > { %s1737_s1 = sshll.u32 %s698_s12, 3  ;;  %725 = vperm.xlu2 %1900, %v715_v8   ;;  %1901 = vset.pattern.permute.xlu0 %v2082_v9  ;;  %v912_v29 = vunpack.c.l.s4 %v2086_v28  ;;  %v2087_v37 = vmov 1934713408   ;;  %vm1027_vm4 = vcmask 64512   ;;  %s2595_s26 = sld [smem:[#allocation24_spill]] }
  0x3b   : > { %v936_v38 = vunpack.c.l.s4 %v2087_v37  ;;  %s2596_s27 = sld [smem:[#allocation25_spill]]  ;;  %s1736_s2 = sshll.u32 %s2266_s16, 3 }
  0x3c   : > { %s703_s29 = scalar_lea.vmem %s2593_s28, %s1737_s1  ;;  %s2083_s28 = smov 104   ;;  %v913_v34 = vunpack.c.0.s8 %v912_v29 }
  0x3d   : > { %v1818_v0 = vld [vmem:[%s2594_s23 + $0x8] sm:$0xff]  ;;  %v1817_v2 = vld [vmem:[%s2594_s23] sm:$0xff]  ;;  %v2326_v44 = vunpack.c.0.s8 %v936_v38  ;;  %s2597_s17 = sld [smem:[#allocation26_spill]] }
  0x3e   : > { %889 = vmatpush.bf16.msra.mxu2 %v1818_v0  ;;  %v2292_v3 = vld [vmem:[%s703_s29] sm:$0xff]  ;;  %s2084_s29 = smov 120   ;;  %s2600_s19 = sld [smem:[#allocation30_spill]] }
  0x3f   : > { %v858_v5 = vpack.c.bf16 %v2292_v3, %v2292_v3  ;;  %1746 = vmatmul.msk.bf16.vlgmr.msra.gmra.mxu0 %vm748_vm0, %v1813_v6  ;;  %s2602_s24 = sld [smem:[#allocation29_spill]] }
  0x42   : > { %890 = vmatpush.bf16.msra.mxu2 %v1817_v2  ;;  %730 = vperm.xlu2 %1900, %v716_v10  }
  0x45   : > { %1766 = vmatmul.msk.bf16.vlgmr.msra.gmra.mxu2 %vm748_vm0, %v858_v5 }
  0x4f   : > { %1747 = vmatmul.msk.bf16.gmra.mxu0 %vm748_vm0, %v1814_v7 }
  0x94   : > { %v726_v18 = vpop.permute.xlu2 %725 }
  0x9c   : > { %v731_v20 = vpop.permute.xlu2 %730 }
  0xbc   : > { %v767_v17 = vpop.f32.mrf.mxu0 }
  0xc4   : > { %v769_v19 = vpop.f32.mrf.mxu0 }
  0xc5   : > { %v770_v23 = vadd.f32 %v769_v19, %v726_v18 }
  0xc7   : > { %v841_v25 = vpack.c.bf16 %v770_v23, %v770_v23 }
  0xc8   : > { %v892_v12 = vpop.f32.mrf.mxu2 }
  0xc9   : > { %v893_v13 = vadd.f32 %v1902_v11, %v892_v12  ;;  %846 = vst.msk [vmem:[#allocation2 + $0x4] sm:$0xf] %vm844_vm1, %v841_v25 }
  0xcb   : > { %903 = vrot.lane.b32.xlu1 %v893_v13, %s2083_s28  ;;  %897 = vrot.lane.b32.xlu0 %v893_v13, %s2084_s29  ;;  %v909_v40 = vrot.slane %v893_v13, 4  ;;  %s2598_s29 = sld [smem:[#allocation27_spill]] }
  0xcc   : > { %v772_v21 = vpop.f32.mrf.mxu0 }
  0xcd   : > { %v773_v22 = vadd.f32 %v772_v21, %v731_v20 }
  0xcf   : > { %v842_v24 = vpack.c.bf16 %v773_v22, %v773_v22 }
  0xd0   : > { %v894_v14 = vpop.f32.mrf.mxu2  ;;  %v1022_v5 = vld [vmem:[#allocation2 + $0x4] sm:$0xf] }
  0xd1   : > { %847 = vst.msk [vmem:[#allocation2 + $0x8] sm:$0xf] %vm844_vm1, %v842_v24  ;;  %v1052_v14 = vsel %vm1031_vm2, %v1022_v5, 0  ;;  %v784_v5 = vld [vmem:[%s2547_s8 + $0x18] sm:$0xff] }
  0xd3   : > { %900 = vrot.lane.b32.xlu0 %v893_v13, %s2085_s25  ;;  %720 = vperm.xlu1 %1899, %v714_v15  }
  0xd4   : > { %v774_v62 = vpop.f32.mrf.mxu0 }
  0xd8   : > { %v1023_v26 = vld [vmem:[#allocation2 + $0x8] sm:$0xf] }
  0xd9   : > { %v1071_v27 = vsel %vm1031_vm2, %v1023_v26, 0 }
  0xda   : > { %1080 = vmatpush.bf16.msrb.mxu2 %v1071_v27 }
  0xdb   : > { %735 = vperm.xlu0 %1901, %v717_v16  }
 0x13d   : > { %v904_v30 = vpop.permute.xlu1 %903  ;;  %v898_v31 = vpop.permute.xlu0 %897 }
 0x13e   : > { %v919_v32 = vrot.slane %v904_v30, 4  ;;  %v921_v33 = vrot.slane %v898_v31, 4 }
 0x140   : > { %v922_v35 = vsel %vm907_vm3, %v904_v30, %v921_v33  ;;  %v920_v36 = vsel %vm907_vm3, %v919_v32, %v898_v31 }
 0x141   : > { %v930_v39 = vperm.slane %v922_v35, %v913_v34  ;;  %v926_v41 = vperm.slane %v920_v36, %v913_v34 }
 0x143   : > { %v943_v48 = vrot.slane %v930_v39, 4  ;;  %v931_v52 = vrot.slane %v926_v41, 4 }
 0x145   : > { %v901_v42 = vpop.permute.xlu0 %900  ;;  %v721_v43 = vpop.permute.xlu1 %720 }
 0x146   : > { %v906_v45 = vrot.slane %v901_v42, 4  ;;  %v910_v46 = vsel %vm907_vm3, %v901_v42, %v909_v40  ;;  %v768_v47 = vadd.f32 %v767_v17, %v721_v43 }
 0x147   : > { %v918_v49 = vperm.slane %v910_v46, %v913_v34 }
 0x148   : > { %v908_v50 = vsel %vm907_vm3, %v906_v45, %v893_v13  ;;  %v840_v51 = vpack.c.bf16 %v768_v47, %v768_v47 }
 0x149   : > { %v914_v53 = vperm.slane %v908_v50, %v913_v34  ;;  %v944_v54 = vsel %vm907_vm3, %v943_v48, %v918_v49  ;;  %v945_v55 = vrot.slane %v918_v49, 4  ;;  %v1815_v48 = vld [vmem:[%s2546_s7] sm:$0xff] }
 0x14a   : > { %v950_v56 = vperm.slane %v944_v54, %v2326_v44  ;;  %845 = vst.msk [vmem:[#allocation2] sm:$0xf] %vm844_vm1, %v840_v51  ;;  %1756 = vmatmul.msk.bf16.vlgmr.msra.gmra.mxu1 %vm748_vm0, %v1815_v48  ;;  %v1816_v54 = vld [vmem:[%s2546_s7 + $0x8] sm:$0xff] }
 0x14b   : > { %v932_v57 = vsel %vm907_vm3, %v931_v52, %v914_v53  ;;  %v933_v58 = vrot.slane %v914_v53, 4  ;;  %v946_v59 = vsel %vm907_vm3, %v930_v39, %v945_v55  ;;  %v1025_v55 = vld [vmem:[%s2275_s20] sm:$0xf] }
 0x14c   : > { %v938_v60 = vperm.slane %v932_v57, %v2326_v44  ;;  %v954_v61 = vperm.slane %v946_v59, %v2326_v44  ;;  %v959_v2 = vrot.slane %v950_v56, 4 }
 0x14d   : > { %v934_v63 = vsel %vm907_vm3, %v926_v41, %v933_v58  ;;  %v736_v0 = vpop.permute.xlu0 %735 }
 0x14e   : > { %v942_v1 = vperm.slane %v934_v63, %v2326_v44  ;;  %v961_v4 = vrot.slane %v954_v61, 4  ;;  %v775_v6 = vadd.f32 %v774_v62, %v736_v0  ;;  %v955_v7 = vrot.slane %v938_v60, 4 }
 0x14f   : > { %v960_v17 = vsel %vm907_vm3, 0.0, %v959_v2 }
 0x150   : > { %v957_v8 = vrot.slane %v942_v1, 4  ;;  %v962_v9 = vsel %vm907_vm3, 0.0, %v961_v4  ;;  %v974_v10 = vsel %vm907_vm3, %v961_v4, %v950_v56  ;;  %v843_v15 = vpack.c.bf16 %v775_v6, %v775_v6 }
 0x151   : > { %v978_v11 = vperm.slane %v974_v10, %v913_v34  ;;  %v979_v12 = vrot.slane %v962_v9, 4  ;;  %v1021_v13 = vld [vmem:[#allocation2] sm:$0xf]  ;;  %v956_v24 = vsel %vm907_vm3, 0.0, %v955_v7  ;;  %v1026_v56 = vunpack.c.l.bf16 %v1025_v55  ;;  %v782_v7 = vld [vmem:[%s2547_s8 + $0x8] sm:$0xff] }
 0x152   : > { %v958_v16 = vsel %vm907_vm3, 0.0, %v957_v8  ;;  %v963_v18 = vsel %vm907_vm3, %v957_v8, %v938_v60  ;;  %v1033_v19 = vsel %vm1031_vm2, %v1021_v13, 0  ;;  %848 = vst.msk [vmem:[#allocation2 + $0xc] sm:$0xf] %vm844_vm1, %v843_v15 }
 0x153   : > { %v967_v20 = vperm.slane %v963_v18, %v913_v34  ;;  %v968_v21 = vrot.slane %v958_v16, 4  ;;  %v980_v22 = vsel %vm907_vm3, %v979_v12, %v960_v17  ;;  %v999_v23 = vrot.slane %v978_v11, 4  ;;  %1042 = vmatpush.bf16.msra.mxu3 %v1033_v19  ;;  %v783_v12 = vld [vmem:[%s2547_s8 + $0x10] sm:$0xff] }
 0x154   : > { %v984_v25 = vperm.slane %v980_v22, %v913_v34 }
 0x155   : > { %v969_v26 = vsel %vm907_vm3, %v968_v21, %v956_v24  ;;  %v987_v27 = vrot.slane %v967_v20, 4 }
 0x156   : > { %v973_v28 = vperm.slane %v969_v26, %v913_v34  ;;  %v1000_v29 = vsel %vm907_vm3, %v984_v25, %v999_v23  ;;  %v997_v30 = vrot.slane %v984_v25, 4 }
 0x157   : > { %1061 = vmatpush.bf16.msrb.mxu3 %v1052_v14  ;;  %v1008_v31 = vperm.slane %v1000_v29, %v2326_v44 }
 0x158   : > { %v988_v32 = vsel %vm907_vm3, %v973_v28, %v987_v27  ;;  %v985_v33 = vrot.slane %v973_v28, 4  ;;  %v998_v35 = vsel %vm907_vm3, %v997_v30, %v978_v11 }
 0x159   : > { %v996_v36 = vperm.slane %v988_v32, %v2326_v44  ;;  %v1013_v37 = vrot.slane %v1008_v31, 4  ;;  %v1004_v38 = vperm.slane %v998_v35, %v2326_v44  ;;  %v1024_v42 = vld [vmem:[#allocation2 + $0xc] sm:$0xf] }
 0x15a   : > { %v986_v39 = vsel %vm907_vm3, %v985_v33, %v967_v20  ;;  %v1090_v47 = vsel %vm1031_vm2, %v1024_v42, 0  ;;  %1757 = vmatmul.msk.bf16.gmra.mxu1 %vm748_vm0, %v1816_v54 }
 0x15b   : > { %v1014_v40 = vsel %vm907_vm3, %v1013_v37, %v996_v36  ;;  %v992_v34 = vperm.slane %v986_v39, %v2326_v44  ;;  %v1009_v41 = vrot.slane %v1004_v38, 4  ;;  %v1015_v51 = vrot.slane %v996_v36, 4 }
 0x15c   : > { %v1019_v43 = vpack.c.bf16 %v1014_v40, %v1014_v40 }
 0x15d   : > { %v1010_v45 = vsel %vm907_vm3, %v1009_v41, %v992_v34  ;;  %v1011_v44 = vrot.slane %v992_v34, 4  ;;  %v1016_v52 = vsel %vm907_vm3, %v1008_v31, %v1015_v51 }
 0x15e   : > { %1769 = vmatmul.msk.bf16.vlgmr.msrb.gmra.mxu2 %vm1027_vm4, %v1019_v43  ;;  %v1017_v46 = vpack.c.bf16 %v1010_v45, %v1010_v45  ;;  %v1020_v53 = vpack.c.bf16 %v1016_v52, %v1016_v52  ;;  %v781_v52 = vld [vmem:[%s2547_s8] sm:$0xff] }
 0x15f   : > { %v1012_v49 = vsel %vm907_vm3, %v1004_v38, %v1011_v44 }
 0x160   : > { %1767 = vmatmul.msk.bf16.vlgmr.msra.gmra.mxu3 %vm1027_vm4, %v1017_v46  ;;  %v1018_v50 = vpack.c.bf16 %v1012_v49, %v1012_v49 }
 0x161   : > { %1099 = vmatpush.bf16.msra.mxu3 %v1090_v47 }
 0x170   : > { %1768 = vmatmul.msk.bf16.vlgmr.msrb.gmra.mxu3 %vm1027_vm4, %v1018_v50 }
 0x180   : > { %1770 = vmatmul.msk.bf16.vlgmr.msra.gmra.mxu3 %vm1027_vm4, %v1020_v53 }
 0x1c7   : > { %v2389_v13 = vpop.f32.mrf.mxu1 }
 0x1cf   : > { %v832_v14 = vpop.f32.mrf.mxu1 }
 0x1d7   : > { %v835_v21 = vpop.f32.mrf.mxu1 }
 0x1df   : > { %v837_v27 = vpop.f32.mrf.mxu1 }
 0x1e1   : > { %v1082_v57 = vpop.f32.mrf.mxu2 }
 0x1e2   : > { %v1083_v58 = vadd.f32 %v1082_v57, %v1026_v56 }
 0x1e3   : > { %v1044_v59 = vpop.f32.mrf.mxu3 }
 0x1e4   : > { %v1045_v60 = vadd.f32 %v1044_v59, %v1026_v56  ;;  %v1111_v61 = vsel %vm1027_vm4, %v1083_v58, -inf }
 0x1e5   : > { %1112 = vmax.xlane.f32.xlu1 %v1111_v61 }
 0x1e6   : > { %v1105_v62 = vsel %vm1027_vm4, %v1045_v60, -inf }
 0x1e7   : > { %1106 = vmax.xlane.f32.xlu0 %v1105_v62 }
 0x1e9   : > { %v1084_v63 = vpop.f32.mrf.mxu2 }
 0x1eb   : > { %v1046_v0 = vpop.f32.mrf.mxu3 }
 0x1f3   : > { %v1063_v1 = vpop.f32.mrf.mxu3 }
 0x1f4   : > { %v1064_v2 = vadd.f32 %v1063_v1, %v1026_v56 }
 0x1f6   : > { %v1108_v4 = vsel %vm1027_vm4, %v1064_v2, -inf }
 0x1f7   : > { %1109 = vmax.xlane.f32.xlu2 %v1108_v4 }
 0x1fb   : > { %v1065_v6 = vpop.f32.mrf.mxu3  ;;  %802 = vperm.xlu0 %1901, %v784_v5  }
 0x203   : > { %v1101_v8 = vpop.f32.mrf.mxu3  ;;  %792 = vperm.xlu0 %1901, %v782_v7  }
 0x204   : > { %v1102_v9 = vadd.f32 %v1101_v8, %v1026_v56 }
 0x206   : > { %v1114_v10 = vsel %vm1027_vm4, %v1102_v9, -inf }
 0x207   : > { %1115 = vmax.xlane.f32.xlu2 %v1114_v10 }
 0x20b   : > { %v1103_v11 = vpop.f32.mrf.mxu3 }
 0x21f   : > { %797 = vperm.xlu2 %1900, %v783_v12  }
 0x258   : > { %v1113_v15 = vpop.xlane.xlu1 %1112 }
 0x259   : > { %v1119_v16 = vsub.f32 %v1083_v58, %v1113_v15 }
 0x25a   : > { %v1107_v17 = vpop.xlane.xlu0 %1106 }
 0x25b   : > { %v1125_v18 = vmul.f32 1.442695, %v1119_v16  ;;  %v1117_v19 = vsub.f32 %v1045_v60, %v1107_v17 }
 0x25d   : > { %1910 = vpow2.f32 %v1125_v18  ;;  %v1121_v20 = vmul.f32 1.442695, %v1117_v19 }
 0x25f   : > { %1912 = vpow2.f32 %v1121_v20 }
 0x263   : > { %v1911_v22 = vpop.eup %1910 }
 0x264   : > { %v1135_v23 = vsel %vm1027_vm4, %v1911_v22, 0.0 }
 0x265   : > { %1136 = vadd.xlane.f32.xlu1 %v1135_v23  ;;  %v2392_v24 = vpop.eup %1912 }
 0x266   : > { %v1129_v28 = vsel %vm1027_vm4, %v2392_v24, 0.0 }
 0x26a   : > { %v1110_v25 = vpop.xlane.xlu2 %1109 }
 0x26b   : > { %v1118_v26 = vsub.f32 %v1064_v2, %v1110_v25 }
 0x26d   : > { %v1123_v29 = vmul.f32 1.442695, %v1118_v26  ;;  %1130 = vadd.xlane.f32.xlu1 %v1129_v28  ;;  %v803_v30 = vpop.permute.xlu0 %802 }
 0x26e   : > { %v838_v31 = vadd.f32 %v837_v27, %v803_v30 }
 0x26f   : > { %1914 = vpow2.f32 %v1123_v29 }
 0x270   : > { %v852_v32 = vpack.c.bf16 %v838_v31, %v838_v31 }
 0x272   : > { %856 = vst.msk [vmem:[#allocation3 + $0xc] sm:$0xf] %vm844_vm1, %v852_v32 }
 0x275   : > { %v2397_v33 = vpop.eup %1914  ;;  %v793_v35 = vpop.permute.xlu0 %792 }
 0x276   : > { %v833_v36 = vadd.f32 %v832_v14, %v793_v35  ;;  %v1132_v37 = vsel %vm1027_vm4, %v2397_v33, 0.0 }
 0x277   : > { %1133 = vadd.xlane.f32.xlu2 %v1132_v37 }
 0x278   : > { %v850_v38 = vpack.c.bf16 %v833_v36, %v833_v36 }
 0x279   : > { %v1208_v39 = vld [vmem:[#allocation3 + $0xc] sm:$0xf] }
 0x27a   : > { %854 = vst.msk [vmem:[#allocation3 + $0x4] sm:$0xf] %vm844_vm1, %v850_v38  ;;  %v1116_v40 = vpop.xlane.xlu2 %1115  ;;  %v1270_v34 = vsel %vm1027_vm4, %v1208_v39, 0 }
 0x27b   : > { %v1120_v41 = vsub.f32 %v1102_v9, %v1116_v40  ;;  %1279 = vmatpush.bf16.xpose.msrb.mxu3 %v1270_v34 }
 0x27d   : > { %v1127_v42 = vmul.f32 1.442695, %v1120_v41 }
 0x27f   : > { %1916 = vpow2.f32 %v1127_v42 }
 0x281   : > { %v1206_v43 = vld [vmem:[#allocation3 + $0x4] sm:$0xf] }
 0x282   : > { %v798_v45 = vpop.permute.xlu2 %797  ;;  %v1232_v46 = vsel %vm1027_vm4, %v1206_v43, 0 }
 0x283   : > { %v836_v47 = vadd.f32 %v835_v21, %v798_v45  ;;  %1241 = vmatpush.bf16.xpose.msrb.mxu1 %v1232_v46 }
 0x285   : > { %v2404_v48 = vpop.eup %1916  ;;  %v851_v44 = vpack.c.bf16 %v836_v47, %v836_v47 }
 0x286   : > { %v1138_v49 = vsel %vm1027_vm4, %v2404_v48, 0.0 }
 0x287   : > { %855 = vst.msk [vmem:[#allocation3 + $0x8] sm:$0xf] %vm844_vm1, %v851_v44  ;;  %1139 = vadd.xlane.f32.xlu1 %v1138_v49  ;;  %v1778_v44 = vld [vmem:[%s2548_s9 + $0x8] sm:$0xf] }
 0x288   : > { %v1343_v49 = vsel %vm1031_vm2, %v1778_v44, 0 }
 0x28e   : > { %v1207_v50 = vld [vmem:[#allocation3 + $0x8] sm:$0xf] }
 0x28f   : > { %v1251_v51 = vsel %vm1027_vm4, %v1207_v50, 0  ;;  %v1776_v50 = vld [vmem:[%s2548_s9 + $0x4] sm:$0xf] }
 0x290   : > { %1260 = vmatpush.bf16.xpose.msra.mxu2 %v1251_v51  ;;  %v1321_v51 = vsel %vm1031_vm2, %v1776_v50, 0 }
 0x291   : > { %1330 = vmatpush.bf16.msra.mxu1 %v1321_v51 }
 0x298   : > { %1352 = vmatpush.bf16.msrb.mxu2 %v1343_v49  ;;  %v1906_v49 = vld [vmem:[%s2596_s27] ss:$0 sm:$0xff]  ;;  %s2599_s27 = sld [smem:[#allocation28_spill]] }
 0x2a0   : > { %787 = vperm.xlu1 %1899, %v781_v52  }
 0x2d8   : > { %v1137_v53 = vpop.xlane.xlu1 %1136 }
 0x2d9   : > { %1918 = vrcp.f32 %v1137_v53  ;;  %v1180_v57 = vand.u32 2147483648, %v1137_v53  ;;  %v1178_v59 = vand.u32 2147483647, %v1137_v53  ;;  %vm1174_vm6 = vweird.f32 %v1137_v53 }
 0x2db   : > { %v1181_v61 = vor.u32 1.1754944e-38, %v1180_v57  ;;  %vm1179_vm8 = vcmp.eq.f32.partialorder %v1178_v59, 8.507059e+37 }
 0x2df   : > { %v1919_v54 = vpop.eup %1918 }
 0x2e0   : > { %v1170_v55 = vmul.f32 %v1919_v54, %v1137_v53  ;;  %vm1175_vm5 = vweird.f32 %v1919_v54  ;;  %v1131_v5 = vpop.xlane.xlu1 %1130 }
 0x2e1   : > { %vm1176_vm7 = vmor %vm1174_vm6, %vm1175_vm5  ;;  %v1152_v34 = vand.u32 2147483648, %v1131_v5  ;;  %vm1146_vm6 = vweird.f32 %v1131_v5  ;;  %v1150_v41 = vand.u32 2147483647, %v1131_v5 }
 0x2e2   : > { %v1171_v56 = vsub.f32 1.0, %v1170_v55 }
 0x2e3   : > { %v1153_v43 = vor.u32 1.1754944e-38, %v1152_v34 }
 0x2e4   : > { %v1172_v58 = vmul.f32 %v1919_v54, %v1171_v56 }
 0x2e6   : > { %v1173_v60 = vadd.f32 %v1919_v54, %v1172_v58  ;;  %v1294_v58 = vld [vmem:[%s2548_s9] sm:$0xf] }
 0x2e7   : > { %v1299_v59 = vsel %vm1031_vm2, %v1294_v58, 0 }
 0x2e8   : > { %v1177_v62 = vsel %vm1176_vm7, %v1919_v54, %v1173_v60 }
 0x2e9   : > { %v1182_v63 = vsel %vm1179_vm8, %v1181_v61, %v1177_v62  ;;  %vm1151_vm8 = vcmp.eq.f32.partialorder %v1150_v41, 8.507059e+37 }
 0x2ea   : > { %v1199_v0 = vmul.f32 %v1911_v22, %v1182_v63  ;;  %v1134_v1 = vpop.xlane.xlu2 %1133 }
 0x2eb   : > { %1920 = vrcp.f32 %v1134_v1  ;;  %v1166_v9 = vand.u32 2147483648, %v1134_v1  ;;  %v1164_v10 = vand.u32 2147483647, %v1134_v1  ;;  %vm1160_vm10 = vweird.f32 %v1134_v1 }
 0x2ec   : > { %v1203_v2 = vpack.c.bf16 %v1199_v0, %v1199_v0 }
 0x2ed   : > { %v1167_v12 = vor.u32 1.1754944e-38, %v1166_v9  ;;  %vm1165_vm12 = vcmp.eq.f32.partialorder %v1164_v10, 8.507059e+37  ;;  %v1903_v10 = vld [vmem:[%s2549_s10] ss:$0 sm:$0xff] }
 0x2ee   : > { %1773 = vmatmul.msk.bf16.vlgmr.msra.gmra.mxu2 %vm1027_vm4, %v1203_v2 }
 0x2f1   : > { %v1921_v4 = vpop.eup %1920 }
 0x2f2   : > { %v1156_v6 = vmul.f32 %v1921_v4, %v1134_v1  ;;  %vm1161_vm9 = vweird.f32 %v1921_v4 }
 0x2f3   : > { %vm1162_vm11 = vmor %vm1160_vm10, %vm1161_vm9 }
 0x2f4   : > { %v1157_v7 = vsub.f32 1.0, %v1156_v6 }
 0x2f6   : > { %v1158_v8 = vmul.f32 %v1921_v4, %v1157_v7 }
 0x2f8   : > { %v1159_v11 = vadd.f32 %v1921_v4, %v1158_v8 }
 0x2fa   : > { %v1140_v14 = vpop.xlane.xlu1 %1139  ;;  %v1163_v15 = vsel %vm1162_vm11, %v1921_v4, %v1159_v11 }
 0x2fb   : > { %1922 = vrcp.f32 %v1140_v14  ;;  %v1168_v16 = vsel %vm1165_vm12, %v1167_v12, %v1163_v15  ;;  %v1194_v22 = vand.u32 2147483648, %v1140_v14  ;;  %v1192_v25 = vand.u32 2147483647, %v1140_v14 }
 0x2fc   : > { %v1198_v17 = vmul.f32 %v2397_v33, %v1168_v16  ;;  %1924 = vrcp.f32 %v1131_v5  ;;  %vm1188_vm14 = vweird.f32 %v1140_v14 }
 0x2fd   : > { %v1195_v28 = vor.u32 1.1754944e-38, %v1194_v22  ;;  %vm1193_vm3 = vcmp.eq.f32.partialorder %v1192_v25, 8.507059e+37 }
 0x2fe   : > { %v1202_v18 = vpack.c.bf16 %v1198_v17, %v1198_v17 }
 0x300   : > { %1772 = vmatmul.msk.bf16.vlgmr.msrb.gmra.mxu1 %vm1027_vm4, %v1202_v18 }
 0x301   : > { %v1923_v19 = vpop.eup %1922 }
 0x302   : > { %v1184_v20 = vmul.f32 %v1923_v19, %v1140_v14  ;;  %vm1189_vm13 = vweird.f32 %v1923_v19  ;;  %v1925_v26 = vpop.eup %1924 }
 0x303   : > { %vm1190_vm15 = vmor %vm1188_vm14, %vm1189_vm13  ;;  %v1142_v30 = vmul.f32 %v1925_v26, %v1131_v5  ;;  %vm1147_vm5 = vweird.f32 %v1925_v26  ;;  %vm1539_vm14 = vcmask 523264  }
 0x304   : > { %v1185_v21 = vsub.f32 1.0, %v1184_v20  ;;  %vm1148_vm7 = vmor %vm1146_vm6, %vm1147_vm5  ;;  %v2088_v20 = vmov 32.0  }
 0x305   : > { %v1143_v35 = vsub.f32 1.0, %v1142_v30  ;;  %1926 = vrcp.f32 %v2088_v20 }
 0x306   : > { %v1186_v23 = vmul.f32 %v1923_v19, %v1185_v21 }
 0x307   : > { %v1144_v37 = vmul.f32 %v1925_v26, %v1143_v35 }
 0x308   : > { %v1187_v27 = vadd.f32 %v1923_v19, %v1186_v23 }
 0x309   : > { %v1145_v40 = vadd.f32 %v1925_v26, %v1144_v37 }
 0x30a   : > { %v1191_v29 = vsel %vm1190_vm15, %v1923_v19, %v1187_v27 }
 0x30b   : > { %v1196_v31 = vsel %vm1193_vm3, %v1195_v28, %v1191_v29  ;;  %v1149_v42 = vsel %vm1148_vm7, %v1925_v26, %v1145_v40  ;;  %v1927_v21 = vpop.eup %1926 }
 0x30c   : > { %v1200_v32 = vmul.f32 %v2404_v48, %v1196_v31  ;;  %v1154_v46 = vsel %vm1151_vm8, %v1153_v43, %v1149_v42  ;;  %v1388_v22 = vmul.f32 32.0, %v1927_v21  ;;  %v1904_v43 = vld [vmem:[%s2550_s11] ss:$0 sm:$0xff] }
 0x30d   : > { %v1197_v48 = vmul.f32 %v2392_v24, %v1154_v46  ;;  %v1780_v24 = vld [vmem:[%s2548_s9 + $0xc] sm:$0xf]  ;;  %v1905_v46 = vld [vmem:[%s2595_s26] ss:$0 sm:$0xff]  ;;  %s1810_s26 = sshll.u32 %s2072_s21, 3  ;;  %s696_s21 = scalar_lea.vmem [#allocation9], %s1736_s2 }
 0x30e   : > { %v1204_v33 = vpack.c.bf16 %v1200_v32, %v1200_v32  ;;  %v1365_v54 = vsel %vm1031_vm2, %v1780_v24, 0  ;;  %v1389_v23 = vsub.f32 1.0, %v1388_v22  ;;  %v1820_v32 = vld [vmem:[%s2552_s13 + $0x8] sm:$0xff]  ;;  %s1602_s0 = scalar_lea.hbm %s2600_s19, %s1810_s26  ;;  %s1604_s3 = sshll.u32 %s696_s21, 4  ;;  %s1605_s3 = int_to_ptr.vmem [resolvable:$true] %s1604_s3 }
 0x30f   : > { %1374 = vmatpush.bf16.msra.mxu3 %v1365_v54  ;;  %s1606_s28 = sshll.u32 %s1602_s0, 4  ;;  %s2014_s2 = scalar_lea.hbm %s2600_s19, 16  ;;  %s1607_s28 = int_to_ptr.hbm [resolvable:$true] %s1606_s28 }
 0x310   : > { %1774 = vmatmul.msk.bf16.vlgmr.msrb.gmra.mxu3 %vm1027_vm4, %v1204_v33  ;;  %v1390_v25 = vmul.f32 %v1927_v21, %v1389_v23  ;;  %v1819_v33 = vld [vmem:[%s2552_s13] sm:$0xff]  ;;  %s2008_s25 = sshra.s32 %s1607_s28, 4  ;;  %s2009_s25 = int_to_ptr.hbm [resolvable:$true] %s2008_s25 }
 0x311   : > { %s2010_s26 = scalar_lea.hbm %s2009_s25, 8  ;;  %p2015_p8 = scmp.lt.s32.totalorder %s2009_s25, %s2600_s19 }
 0x312   : > { %v788_v36 = vpop.permute.xlu1 %787  ;;  %v1391_v26 = vadd.f32 %v1927_v21, %v1390_v25  ;;  %p2011_p5 = scmp.ne.s32.totalorder %s2009_s25, %s2010_s26  ;;  %p2016_p10 = scmp.lt.s32.totalorder %s2014_s2, %s2010_s26 }
 0x313   : > { %v831_v38 = vadd.f32 %v2389_v13, %v788_v36  ;;  %v1201_v13 = vpack.c.bf16 %v1197_v48, %v1197_v48 }
 0x314   : > { %p2012_p6 = pnand %p2011_p5, %p2240_p9  ;;  %p2017_p13 = por %p2016_p10, %p2015_p8 }
 0x315   : > { %v849_v39 = vpack.c.bf16 %v831_v38, %v831_v38 }
 0x316   : > { %p2013_p7 = pneg %p2012_p6 }
 0x317   : > { %853 = vst.msk [vmem:[#allocation3] sm:$0xf] %vm844_vm1, %v849_v39  ;;  %vm1392_vm1 = vweird.f32 %v1927_v21 }
 0x318   : > { %v2448_v27 = vsel %vm1392_vm1, %v1927_v21, %v1391_v26  ;;  %p2018_p0 = pnand %p2017_p13, %p2013_p7 }
 0x31e   : > { %v1205_v45 = vld [vmem:[#allocation3] sm:$0xf] }
 0x31f   : > { %v1213_v47 = vsel %vm1027_vm4, %v1205_v45, 0 }
 0x320   : > { %1222 = vmatpush.bf16.xpose.msrb.mxu0 %v1213_v47 }
 0x327   : > { %1771 = vmatmul.msk.bf16.vlgmr.msrb.gmra.mxu0 %vm1027_vm4, %v1201_v13 }
 0x328   : > { %1308 = vmatpush.bf16.msra.mxu0 %v1299_v59 }
 0x32c   : > { %1451 = vmatpush.bf16.msrb.mxu0 %v1820_v32 }
 0x330   : > { %1452 = vmatpush.bf16.msrb.mxu0 %v1819_v33 }
 0x371   : > { %v1262_v52 = vpop.f32.mrf.mxu2 }
 0x372   : > { %v1287_v53 = vpack.c.bf16 %v1262_v52, %v1262_v52 }
 0x374   : > { %1779 = vmatmul.msk.bf16.vlgmr.msrb.gmra.mxu2 %vm1027_vm4, %v1287_v53 }
 0x379   : > { %v1264_v55 = vpop.f32.mrf.mxu2 }
 0x37a   : > { %v1824_v55 = vld [vmem:[%s2597_s17 + $0x18] sm:$0xff] }
 0x37b   : > { %1547 = vmatpush.bf16.msrb.mxu1 %v1824_v55  ;;  %v1909_v55 = vld [vmem:[%s2602_s24] ss:$0 sm:$0xff] }
 0x37d   : > { %v1243_v56 = vpop.f32.mrf.mxu1 }
 0x37e   : > { %v1286_v57 = vpack.c.bf16 %v1243_v56, %v1243_v56 }
 0x380   : > { %1777 = vmatmul.msk.bf16.vlgmr.msra.gmra.mxu1 %vm1027_vm4, %v1286_v57 }
 0x385   : > { %v1245_v60 = vpop.f32.mrf.mxu1 }
 0x386   : > { %v1823_v60 = vld [vmem:[%s2597_s17 + $0x10] sm:$0xff] }
 0x387   : > { %1548 = vmatpush.bf16.msrb.mxu1 %v1823_v60 }
 0x393   : > { %v1281_v61 = vpop.f32.mrf.mxu3 }
 0x394   : > { %v1288_v62 = vpack.c.bf16 %v1281_v61, %v1281_v61 }
 0x396   : > { %1781 = vmatmul.msk.bf16.vlgmr.msra.gmra.mxu3 %vm1027_vm4, %v1288_v62 }
 0x39b   : > { %v1283_v63 = vpop.f32.mrf.mxu3 }
 0x3a4   : > { %v1224_v0 = vpop.f32.mrf.mxu0 }
 0x3a5   : > { %v1285_v1 = vpack.c.bf16 %v1224_v0, %v1224_v0 }
 0x3a7   : > { %1775 = vmatmul.msk.bf16.vlgmr.msra.gmra.mxu0 %vm1027_vm4, %v1285_v1  ;;  %v1822_v1 = vld [vmem:[%s2597_s17 + $0x8] sm:$0xff] }
 0x3a8   : > { %1549 = vmatpush.bf16.msrb.mxu1 %v1822_v1 }
 0x3ac   : > { %v1226_v2 = vpop.f32.mrf.mxu0 }
 0x3f7   : > { %v1354_v4 = vpop.f32.mrf.mxu2 }
 0x3fd   : > { %v1332_v5 = vpop.f32.mrf.mxu1 }
 0x3ff   : > { %v1356_v6 = vpop.f32.mrf.mxu2 }
 0x400   : > { %v1821_v6 = vld [vmem:[%s2597_s17] sm:$0xff] }
 0x401   : > { %1550 = vmatpush.bf16.msrb.mxu1 %v1821_v6 }
 0x405   : > { %v1334_v7 = vpop.f32.mrf.mxu1 }
 0x419   : > { %v1376_v8 = vpop.f32.mrf.mxu3 }
 0x421   : > { %v1378_v9 = vpop.f32.mrf.mxu3 }
 0x424   : > { %v1310_v11 = vpop.f32.mrf.mxu0 }
 0x425   : > { %v1314_v12 = vadd.f32 %v1903_v10, %v1310_v11 }
 0x427   : > { %v1336_v14 = vadd.f32 %v1332_v5, %v1314_v12 }
 0x429   : > { %v1358_v15 = vadd.f32 %v1354_v4, %v1336_v14 }
 0x42b   : > { %v1380_v16 = vadd.f32 %v1376_v8, %v1358_v15 }
 0x42c   : > { %v1312_v17 = vpop.f32.mrf.mxu0 }
 0x42d   : > { %v1381_v18 = vadd.f32 %v1380_v16, %v2292_v3 }
 0x42f   : > { %v1384_v19 = vsel %vm748_vm0, %v1381_v18, 0.0 }
 0x430   : > { %1385 = vadd.xlane.f32.xlu0 %v1384_v19 }
 0x4a3   : > { %v1386_v28 = vpop.xlane.xlu0 %1385 }
 0x4a4   : > { %v1394_v29 = vmul.f32 %v2448_v27, %v1386_v28 }
 0x4a6   : > { %v1395_v30 = vsub.f32 %v1381_v18, %v1394_v29 }
 0x4a8   : > { %v1396_v31 = vmul.f32 %v1395_v30, %v1395_v30 }
 0x4aa   : > { %v1397_v3 = vsel %vm748_vm0, %v1396_v31, 0.0 }
 0x4ab   : > { %1398 = vadd.xlane.f32.xlu1 %v1397_v3 }
 0x51e   : > { %v1399_v35 = vpop.xlane.xlu1 %1398 }
 0x51f   : > { %v1400_v36 = vmul.f32 %v1399_v35, %v2448_v27 }
 0x521   : > { %v1401_v37 = vadd.f32 1e-12, %v1400_v36  ;;  %v1907_v36 = vld [vmem:[%s2598_s29] ss:$0 sm:$0xff]  ;;  %s1591_s29 = scalar_lea.sflag [#allocation6], %s2266_s16 }
 0x523   : > { %1928 = vrsqrt.f32 %v1401_v37  ;;  %vm1408_vm4 = vweird.f32 %v1401_v37 }
 0x529   : > { %v1929_v38 = vpop.eup %1928 }
 0x52a   : > { %v1403_v39 = vmul.f32 %v1929_v38, %v1401_v37  ;;  %vm1409_vm2 = vweird.f32 %v1929_v38 }
 0x52b   : > { %vm1410_vm9 = vmor %vm1408_vm4, %vm1409_vm2 }
 0x52c   : > { %v1404_v40 = vmul.f32 %v1929_v38, %v1403_v39 }
 0x52e   : > { %v1405_v34 = vmul.f32 0.5, %v1404_v40 }
 0x530   : > { %v1406_v41 = vsub.f32 1.5, %v1405_v34 }
 0x532   : > { %v1407_v42 = vmul.f32 %v1929_v38, %v1406_v41 }
 0x534   : > { %v1411_v45 = vsel %vm1410_vm9, %v1929_v38, %v1407_v42 }
 0x535   : > { %v1412_v47 = vmul.f32 %v1411_v45, %v1395_v30 }
 0x537   : > { %v1416_v48 = vmul.f32 %v1904_v43, %v1412_v47 }
 0x539   : > { %v2465_v13 = vadd.f32 %v1905_v46, %v1416_v48 }
 0x53b   : > { %v1421_v44 = vpack.c.bf16 %v2465_v13, %v2465_v13 }
 0x53d   : > { %1790 = vmatmul.msk.bf16.vlgmr.msrb.gmra.mxu0 %vm748_vm0, %v1421_v44 }
 0x5ba   : > { %v1454_v50 = vpop.f32.mrf.mxu0 }
 0x5bb   : > { %v1455_v51 = vadd.f32 %v1906_v49, %v1454_v50 }
 0x5bd   : > { %v1459_v52 = vmul.f32 0.70710677, %v1455_v51  ;;  %v1458_v3 = vmul.f32 0.5, %v1455_v51 }
 0x5bf   : > { %v1460_v53 = vmul.f32 %v1459_v52, %v1459_v52 }
 0x5c1   : > { %v1461_v24 = vmin.f32 %v1460_v53, 16.0 }
 0x5c2   : > { %v1456_v54 = vpop.f32.mrf.mxu0 }
 0x5c3   : > { %v1462_v56 = vmul.f32 2.1237322e-06, %v1461_v24  ;;  %v1473_v57 = vmul.f32 3.8918573e-05, %v1461_v24 }
 0x5c5   : > { %v1463_v58 = vadd.f32 0.00028619796, %v1462_v56  ;;  %v1474_v59 = vadd.f32 0.001143296, %v1473_v57 }
 0x5c7   : > { %v1464_v61 = vmul.f32 %v1463_v58, %v1461_v24  ;;  %v1475_v62 = vmul.f32 %v1474_v59, %v1461_v24 }
 0x5c9   : > { %v1476_v63 = vadd.f32 0.014752088, %v1475_v62  ;;  %v1465_v0 = vadd.f32 0.0036580483, %v1464_v61 }
 0x5cb   : > { %v1477_v2 = vmul.f32 %v1476_v63, %v1461_v24  ;;  %v1466_v5 = vmul.f32 %v1465_v0, %v1461_v24 }
 0x5cd   : > { %v1478_v4 = vadd.f32 0.112945676, %v1477_v2  ;;  %v1467_v9 = vadd.f32 0.05243302, %v1466_v5 }
 0x5cf   : > { %v1479_v7 = vmul.f32 %v1478_v4, %v1461_v24  ;;  %v1468_v12 = vmul.f32 %v1467_v9, %v1461_v24 }
 0x5d1   : > { %v1480_v8 = vadd.f32 0.4994258, %v1479_v7  ;;  %v1469_v14 = vadd.f32 0.18741608, %v1468_v12 }
 0x5d3   : > { %v1481_v10 = vmul.f32 %v1480_v8, %v1461_v24  ;;  %v1470_v16 = vmul.f32 %v1469_v14, %v1461_v24  ;;  %v1908_v24 = vld [vmem:[%s2599_s27] ss:$0 sm:$0xff] }
 0x5d5   : > { %v1482_v11 = vadd.f32 1.0, %v1481_v10  ;;  %v1471_v20 = vadd.f32 1.1283791, %v1470_v16 }
 0x5d7   : > { %1930 = vrcp.f32 %v1482_v11  ;;  %v1494_v19 = vand.u32 2147483648, %v1482_v11  ;;  %v1492_v22 = vand.u32 2147483647, %v1482_v11  ;;  %vm1488_vm11 = vweird.f32 %v1482_v11 }
 0x5d8   : > { %v1472_v26 = vmul.f32 %v1471_v20, %v1459_v52 }
 0x5d9   : > { %v1495_v25 = vor.u32 1.1754944e-38, %v1494_v19  ;;  %vm1493_vm13 = vcmp.eq.f32.partialorder %v1492_v22, 8.507059e+37 }
 0x5dd   : > { %v1931_v15 = vpop.eup %1930 }
 0x5de   : > { %v1484_v17 = vmul.f32 %v1931_v15, %v1482_v11  ;;  %vm1489_vm10 = vweird.f32 %v1931_v15 }
 0x5df   : > { %vm1490_vm12 = vmor %vm1488_vm11, %vm1489_vm10 }
 0x5e0   : > { %v1485_v18 = vsub.f32 1.0, %v1484_v17 }
 0x5e2   : > { %v1486_v21 = vmul.f32 %v1931_v15, %v1485_v18 }
 0x5e4   : > { %v1487_v23 = vadd.f32 %v1931_v15, %v1486_v21 }
 0x5e6   : > { %v1491_v28 = vsel %vm1490_vm12, %v1931_v15, %v1487_v23 }
 0x5e7   : > { %v1496_v29 = vsel %vm1493_vm13, %v1495_v25, %v1491_v28 }
 0x5e8   : > { %v1497_v30 = vmul.f32 %v1496_v29, %v1472_v26 }
 0x5ea   : > { %v1791_v31 = vclamps-f32 %v1497_v30, 1.0 }
 0x5ec   : > { %v1500_v32 = vadd.f32 1.0, %v1791_v31 }
 0x5ee   : > { %v1501_v33 = vmul.f32 %v1500_v32, %v1458_v3 }
 0x5f0   : > { %v1502_v35 = vpack.c.bf16 %v1501_v33, %v1501_v33 }
 0x5f2   : > { %1808 = vmatmul.msk.bf16.vlgmr.msrb.gmra.mxu1 %vm1539_vm14, %v1502_v35 }
 0x66f   : > { %v1552_v37 = vpop.f32.mrf.mxu1 }
 0x670   : > { %v1553_v38 = vadd.f32 %v1907_v36, %v1552_v37 }
 0x672   : > { %v1556_v39 = vadd.f32 %v1553_v38, %v2465_v13 }
 0x674   : > { %v1559_v40 = vsel %vm748_vm0, %v1556_v39, 0.0 }
 0x675   : > { %1560 = vadd.xlane.f32.xlu2 %v1559_v40 }
 0x677   : > { %v1554_v34 = vpop.f32.mrf.mxu1 }
 0x6e8   : > { %v1561_v41 = vpop.xlane.xlu2 %1560 }
 0x6e9   : > { %v1562_v42 = vmul.f32 %v1561_v41, %v2448_v27 }
 0x6eb   : > { %v1563_v43 = vsub.f32 %v1556_v39, %v1562_v42 }
 0x6ed   : > { %v1564_v45 = vmul.f32 %v1563_v43, %v1563_v43 }
 0x6ef   : > { %v1565_v46 = vsel %vm748_vm0, %v1564_v45, 0.0 }
 0x6f0   : > { %1566 = vadd.xlane.f32.xlu2 %v1565_v46 }
 0x763   : > { %v1567_v47 = vpop.xlane.xlu2 %1566 }
 0x764   : > { %v1568_v48 = vmul.f32 %v1567_v47, %v2448_v27 }
 0x766   : > { %v1569_v44 = vadd.f32 1e-12, %v1568_v48 }
 0x768   : > { %1932 = vrsqrt.f32 %v1569_v44  ;;  %vm1576_vm3 = vweird.f32 %v1569_v44 }
 0x76e   : > { %v1933_v13 = vpop.eup %1932 }
 0x76f   : > { %v1571_v49 = vmul.f32 %v1933_v13, %v1569_v44  ;;  %vm1577_vm15 = vweird.f32 %v1933_v13 }
 0x770   : > { %vm1578_vm5 = vmor %vm1576_vm3, %vm1577_vm15 }
 0x771   : > { %v1572_v50 = vmul.f32 %v1933_v13, %v1571_v49 }
 0x773   : > { %v1573_v51 = vmul.f32 0.5, %v1572_v50 }
 0x775   : > { %v1574_v52 = vsub.f32 1.5, %v1573_v51 }
 0x777   : > { %v1575_v53 = vmul.f32 %v1933_v13, %v1574_v52 }
 0x779   : > { %v1579_v27 = vsel %vm1578_vm5, %v1933_v13, %v1575_v53 }
 0x77a   : > { %v1580_v54 = vmul.f32 %v1579_v27, %v1563_v43 }
 0x77c   : > { %v1584_v56 = vmul.f32 %v1908_v24, %v1580_v54 }
 0x77e   : > { %v1588_v57 = vadd.f32 %v1909_v55, %v1584_v56 }
 0x780   : > { %1589 = vst.msk [vmem:[%s696_s21] sm:$0xff] %vm748_vm0, %v1588_v57 }
 0x781   : > { %2021 = shalt.err (!%p2018_p0)
}
 0x782   : > { %1829 = dma.vmem_to_hbm [thread:$0]  (%p2240_p9), %s1605_s3, 128, %s1607_s28, %s1591_s29  }
 0x783 PF: > { %s2603_s16 = sld [smem:[#allocation13_spill]]  ;;  %p1839_p1 = pnand %p1728_p12, %p2247_p11 }
 0x785   : > { %p1840_p2 = pneg %p1839_p1 }
 0x789   : > { %s1618_s12 = sand.u32 1, %s2603_s16  }
 0x78a   : > { %s1619_s1 = scalar_lea.sflag [#allocation6], %s1618_s12 }
 0x78b   : > { %2055 = dma.done.wait (%p1840_p2), %s1619_s1, 128  }
 0x78c   : > { %2057 = vsyncadd (%p1840_p2), %s1619_s1, 4294967168  ;;  %s38_s22 = sadd.s32 1, %s2080_s22   ;;  %s2605_s24 = sld [smem:[#allocation14_spill]] }
 0x78d   : > { %p35_p3 = scmp.ge.s32.totalorder %s38_s22, 4   ;;  %s2606_s20 = sld [smem:[#allocation18_spill]] }
 0x78e   : > { %s2607_s21 = sld [smem:[#allocation15_spill]]  ;;  %s2609_s0 = smov %s2064_s30 }
 0x78f   : > { %s2608_s1 = sld [smem:[#allocation16_spill]]  ;;  %37 = sbr.rel (!%p35_p3) target bundleno = 20 (0x14), region = 164 }
 0x792   : > { %s2610_s30 = smov %s2605_s24 }
 0x794   :  { %1625 = vsyncpa [#allocation5], 1 }
 0x795   :  { %1627 = vsyncpa [#allocation5 + $0x1], 1 }
 0x796   :  { %1628 = vsyncpa [#allocation8], 1 }
 0x797   :  { %1630 = vsyncpa [#allocation8 + $0x1], 1 }
 0x798   :  { %1631 = vsyncpa [#allocation6], 1 }
 0x799   :  { %1633 = vsyncpa [#allocation6 + $0x1], 1 }

</bundles_post_ra>
